<compile_context>
chip_gen: v6e
topology: v6e:2x2x1
jax: 0.10.0
libtpu: 0.0.40
codegen_flags: <defaults>
</compile_context>

<pallas_src>
import jax
import jax.numpy as jnp
from jax.experimental import pallas as pl
from jax.experimental.pallas import tpu as pltpu

LANE = 128   # lane width: head activations / output padded to 128 lanes
TB = 8       # batch tile (sublane-aligned); demo batch fits in one tile


# ----------------------------------------------------------------------------
# Fused kernel: conv1+ReLU, conv2+ReLU, conv3+ReLU, (pool⊕fc1)+ReLU, fc2
# Each layer is a single lane-dense MXU matmul on the whole batch tile.
# ----------------------------------------------------------------------------
def _fused_kernel(x_ref, c1_ref, b1_ref, c2_ref, b2_ref, c3_ref, b3_ref,
                  fw1_ref, fb1_ref, fw2_ref, fb2_ref, o_ref):
    f32 = jnp.float32

    def dot(a, b):
        return jnp.dot(a, b, preferred_element_type=f32)

    a = x_ref[...]                                                   # (TB, 512)
    a = jnp.maximum(dot(a, c1_ref[...]) + b1_ref[...], 0.0)          # (TB, 512)
    a = jnp.maximum(dot(a, c2_ref[...]) + b2_ref[...], 0.0)          # (TB, 256)
    a = jnp.maximum(dot(a, c3_ref[...]) + b3_ref[...], 0.0)          # (TB, 128)
    h = jnp.maximum(dot(a, fw1_ref[...]) + fb1_ref[...], 0.0)        # (TB, 128) pool+fc1
    o_ref[...] = dot(h, fw2_ref[...]) + fb2_ref[...]                 # (TB, 128) fc2


# ----------------------------------------------------------------------------
# One-time parameter packing: conv -> dense matmul operands, pool folded into
# fc1, everything padded to lane-dense shapes.
# ----------------------------------------------------------------------------
def _conv_out_size(n, k=3, stride=2, pad=1):
    return (n + 2 * pad - k) // stride + 1


def _selection_matrices(hin, win, k=3, stride=2, pad=1):
    """(k*k, Ho*Wo, Hin*Win) 0/1 gather matrices; all-zero rows = zero padding."""
    ho, wo = _conv_out_size(hin, k, stride, pad), _conv_out_size(win, k, stride, pad)
    oh, ow = jnp.arange(ho), jnp.arange(wo)
    taps = []
    for kh in range(k):
        for kw in range(k):
            ih = stride * oh + kh - pad                              # (Ho,)
            iw = stride * ow + kw - pad                              # (Wo,)
            valid = ((ih >= 0) & (ih < hin))[:, None] & ((iw >= 0) & (iw < win))[None, :]
            flat = jnp.where(valid, ih[:, None] * win + iw[None, :], -1)
            taps.append((flat.reshape(ho * wo, 1) ==
                         jnp.arange(hin * win)[None, :]).astype(jnp.float32))
    return jnp.stack(taps), (ho, wo)


def prepare_pallas_params(params, h, w):
    """Pack weights into kernel layout ONCE (no transposes in the hot path)."""
    prep = {"cms": [], "cbs": []}
    hc, wc = h, w
    for (wt, bt) in params["convs"]:
        cout, cin, k, _ = wt.shape
        sel, (ho, wo) = _selection_matrices(hc, wc, k=k)
        wtaps = jnp.transpose(wt, (2, 3, 1, 0)).reshape(k * k, cin, cout)   # (9, Cin, Cout)
        # Dense conv operator: C[q*Cin+ci, p*Cout+co] = sum_t sel[t,p,q] * W[t,ci,co]
        cm = jnp.einsum("tpq,tio->qipo", sel, wtaps).reshape(hc * wc * cin,
                                                             ho * wo * cout)
        cb = jnp.tile(bt, ho * wo).reshape(1, ho * wo * cout)              # pos-major bias
        prep["cms"].append(cm)
        prep["cbs"].append(cb)
        hc, wc = ho, wo

    n_pos = hc * wc                                   # spatial positions after conv3 (=4)
    w1, b1 = params["fc1"]                            # (16, 32), (16,)
    w2, b2 = params["fc2"]                            # (6, 16),  (6,)
    # AdaptiveAvgPool2d((1,1)) folded into fc1: rows are (pos-major, channel-minor).
    fw1 = jnp.tile(w1.T / float(n_pos), (n_pos, 1))   # (n_pos*32, 16) = (128, 16)
    prep["fw1"] = jnp.pad(fw1, ((0, 0), (0, LANE - w1.shape[0])))                    # (128, 128)
    prep["fb1"] = jnp.pad(b1, (0, LANE - b1.shape[0])).reshape(1, LANE)
    prep["fw2"] = jnp.pad(w2.T, ((0, LANE - w2.shape[1]), (0, LANE - w2.shape[0])))  # (128, 128)
    prep["fb2"] = jnp.pad(b2, (0, LANE - b2.shape[0])).reshape(1, LANE)
    prep["out_dim"] = int(w2.shape[0])
    return prep


# ----------------------------------------------------------------------------
# Forward pass (single pallas_call)
# ----------------------------------------------------------------------------
def ego_motion_net_pallas(x_nchw, prep, tb=TB):
    b, c, h, w = x_nchw.shape
    # NCHW -> (B, H*W*Cin): position-major, channel-minor — matches conv matrix K layout.
    x = jnp.transpose(x_nchw, (0, 2, 3, 1)).astype(jnp.float32).reshape(b, h * w * c)
    b_pad = ((b + tb - 1) // tb) * tb
    if b_pad != b:
        x = jnp.pad(x, ((0, b_pad - b), (0, 0)))      # zero-pad batch to sublane multiple

    c1, c2, c3 = prep["cms"]
    cb1, cb2, cb3 = prep["cbs"]
    k1 = c1.shape[0]

    out = pl.pallas_call(
        _fused_kernel,
        out_shape=jax.ShapeDtypeStruct((b_pad, LANE), jnp.float32),
        grid=(b_pad // tb,),
        in_specs=[
            pl.BlockSpec((tb, k1), lambda i: (i, 0)),            # per-tile input rows
            pl.BlockSpec(c1.shape, lambda i: (0, 0)),            # constants: same block
            pl.BlockSpec(cb1.shape, lambda i: (0, 0)),           #   every step (no refetch)
            pl.BlockSpec(c2.shape, lambda i: (0, 0)),
            pl.BlockSpec(cb2.shape, lambda i: (0, 0)),
            pl.BlockSpec(c3.shape, lambda i: (0, 0)),
            pl.BlockSpec(cb3.shape, lambda i: (0, 0)),
            pl.BlockSpec(prep["fw1"].shape, lambda i: (0, 0)),
            pl.BlockSpec(prep["fb1"].shape, lambda i: (0, 0)),
            pl.BlockSpec(prep["fw2"].shape, lambda i: (0, 0)),
            pl.BlockSpec(prep["fb2"].shape, lambda i: (0, 0)),
        ],
        out_specs=pl.BlockSpec((tb, LANE), lambda i: (i, 0)),    # full-vreg lane-dense store
        compiler_params=pltpu.CompilerParams(
            dimension_semantics=("parallel",),                   # batch tiles across TCs
            vmem_limit_bytes=32 * 1024 * 1024,                   # ~4 MB used, ample headroom
        ),
    )(x, c1, cb1, c2, cb2, c3, cb3,
      prep["fw1"], prep["fb1"], prep["fw2"], prep["fb2"])

    return out[:b, :prep["out_dim"]]                  # strip batch/lane padding once


# ----------------------------------------------------------------------------
# Parameter init (PyTorch-default-style uniform bounds) + pure-JAX reference
# ----------------------------------------------------------------------------
def init_params(key):
    def conv_init(k_, cout, cin, ksz):
        kw_, kb_ = jax.random.split(k_)
        bound = 1.0 / ((cin * ksz * ksz) ** 0.5)
        w = jax.random.uniform(kw_, (cout, cin, ksz, ksz), jnp.float32, -bound, bound)
        b = jax.random.uniform(kb_, (cout,), jnp.float32, -bound, bound)
        return w, b

    def linear_init(k_, cout, cin):
        kw_, kb_ = jax.random.split(k_)
        bound = 1.0 / (cin ** 0.5)
        w = jax.random.uniform(kw_, (cout, cin), jnp.float32, -bound, bound)
        b = jax.random.uniform(kb_, (cout,), jnp.float32, -bound, bound)
        return w, b

    k1, k2, k3, k4, k5 = jax.random.split(key, 5)
    return {
        "convs": [conv_init(k1, 8, 2, 3), conv_init(k2, 16, 8, 3), conv_init(k3, 32, 16, 3)],
        "fc1": linear_init(k4, 16, 32),
        "fc2": linear_init(k5, 6, 16),
    }


def ego_motion_net_reference(x_nchw, params):
    x = jnp.transpose(x_nchw, (0, 2, 3, 1)).astype(jnp.float32)
    for (w, b) in params["convs"]:
        wh = jnp.transpose(w, (2, 3, 1, 0))                          # HWIO
        x = jax.lax.conv_general_dilated(
            x, wh, window_strides=(2, 2), padding=((1, 1), (1, 1)),
            dimension_numbers=("NHWC", "HWIO", "NHWC"))
        x = jnp.maximum(x + b, 0.0)
    x = jnp.mean(x, axis=(1, 2))
    w1, b1 = params["fc1"]
    w2, b2 = params["fc2"]
    h = jnp.maximum(x @ w1.T + b1, 0.0)
    return h @ w2.T + b2


# ----------------------------------------------------------------------------
if __name__ == "__main__":
    key = jax.random.PRNGKey(0)
    k_params, k_x = jax.random.split(key)

    params = init_params(k_params)
    x = jax.random.normal(k_x, (2, 2, 16, 16), dtype=jnp.float32)    # NCHW, 2 in-channels

    prep = prepare_pallas_params(params, 16, 16)                     # one-time packing
    fwd = jax.jit(lambda xx: ego_motion_net_pallas(xx, prep))

    out = jax.block_until_ready(fwd(x))
    ref = jax.block_until_ready(ego_motion_net_reference(x, params))

    assert out.shape == (2, 6), out.shape
    assert jnp.allclose(out, ref, atol=2e-3, rtol=2e-3), (out, ref)

    print("KERNEL_OK")
</pallas_src>

<mosaic_0001>
module attributes {stable_mosaic.version = 11 : i64} {
  func.func @_fused_kernel(%arg0: i32, %arg1: memref<8x512xf32, #tpu.memory_space<vmem>>, %arg2: memref<512x512xf32, #tpu.memory_space<vmem>>, %arg3: memref<1x512xf32, #tpu.memory_space<vmem>>, %arg4: memref<512x256xf32, #tpu.memory_space<vmem>>, %arg5: memref<1x256xf32, #tpu.memory_space<vmem>>, %arg6: memref<256x128xf32, #tpu.memory_space<vmem>>, %arg7: memref<1x128xf32, #tpu.memory_space<vmem>>, %arg8: memref<128x128xf32, #tpu.memory_space<vmem>>, %arg9: memref<1x128xf32, #tpu.memory_space<vmem>>, %arg10: memref<128x128xf32, #tpu.memory_space<vmem>>, %arg11: memref<1x128xf32, #tpu.memory_space<vmem>>, %arg12: memref<8x128xf32, #tpu.memory_space<vmem>>) attributes {dimension_semantics = [#tpu.dimension_semantics<parallel>], iteration_bounds = array<i64: 1>, scalar_prefetch = 0 : i64, scratch_operands = 0 : i64, tpu.core_type = #tpu.core_type<tc>, window_params = [{transform_indices = @transform_0, window_bounds = array<i64: 8, 512>}, {pipeline_mode = #tpu.pipeline_mode<synchronous>, transform_indices = @transform_1, window_bounds = array<i64: 512, 512>}, {pipeline_mode = #tpu.pipeline_mode<synchronous>, transform_indices = @transform_2, window_bounds = array<i64: 1, 512>}, {pipeline_mode = #tpu.pipeline_mode<synchronous>, transform_indices = @transform_3, window_bounds = array<i64: 512, 256>}, {pipeline_mode = #tpu.pipeline_mode<synchronous>, transform_indices = @transform_4, window_bounds = array<i64: 1, 256>}, {pipeline_mode = #tpu.pipeline_mode<synchronous>, transform_indices = @transform_5, window_bounds = array<i64: 256, 128>}, {pipeline_mode = #tpu.pipeline_mode<synchronous>, transform_indices = @transform_6, window_bounds = array<i64: 1, 128>}, {pipeline_mode = #tpu.pipeline_mode<synchronous>, transform_indices = @transform_7, window_bounds = array<i64: 128, 128>}, {pipeline_mode = #tpu.pipeline_mode<synchronous>, transform_indices = @transform_8, window_bounds = array<i64: 1, 128>}, {pipeline_mode = #tpu.pipeline_mode<synchronous>, transform_indices = @transform_9, window_bounds = array<i64: 128, 128>}, {pipeline_mode = #tpu.pipeline_mode<synchronous>, transform_indices = @transform_10, window_bounds = array<i64: 1, 128>}, {transform_indices = @transform_11, window_bounds = array<i64: 8, 128>}]} {
    %c0 = arith.constant 0 : index
    %c0_0 = arith.constant 0 : index
    %0 = vector.load %arg1[%c0, %c0_0] : memref<8x512xf32, #tpu.memory_space<vmem>>, vector<8x512xf32>
    %c0_1 = arith.constant 0 : index
    %c0_2 = arith.constant 0 : index
    %1 = vector.load %arg2[%c0_1, %c0_2] : memref<512x512xf32, #tpu.memory_space<vmem>>, vector<512x512xf32>
    %cst = arith.constant dense<0.000000e+00> : vector<8x512xf32>
    %2 = tpu.matmul %0, %1, %cst {dimension_numbers = #tpu.dot_dimension_numbers<[1], [0], [0], [1], [0, 0, 1, 1], [], []>} : vector<8x512xf32>, vector<512x512xf32>, vector<8x512xf32> -> vector<8x512xf32>
    %c0_3 = arith.constant 0 : index
    %c0_4 = arith.constant 0 : index
    %3 = vector.load %arg3[%c0_3, %c0_4] : memref<1x512xf32, #tpu.memory_space<vmem>>, vector<1x512xf32>
    %4 = vector.broadcast %3 : vector<1x512xf32> to vector<8x512xf32>
    %5 = arith.addf %2, %4 : vector<8x512xf32>
    %cst_5 = arith.constant 0.000000e+00 : f32
    %6 = vector.broadcast %cst_5 : f32 to vector<8x512xf32>
    %7 = arith.maximumf %5, %6 : vector<8x512xf32>
    %c0_6 = arith.constant 0 : index
    %c0_7 = arith.constant 0 : index
    %8 = vector.load %arg4[%c0_6, %c0_7] : memref<512x256xf32, #tpu.memory_space<vmem>>, vector<512x256xf32>
    %cst_8 = arith.constant dense<0.000000e+00> : vector<8x256xf32>
    %9 = tpu.matmul %7, %8, %cst_8 {dimension_numbers = #tpu.dot_dimension_numbers<[1], [0], [0], [1], [0, 0, 1, 1], [], []>} : vector<8x512xf32>, vector<512x256xf32>, vector<8x256xf32> -> vector<8x256xf32>
    %c0_9 = arith.constant 0 : index
    %c0_10 = arith.constant 0 : index
    %10 = vector.load %arg5[%c0_9, %c0_10] : memref<1x256xf32, #tpu.memory_space<vmem>>, vector<1x256xf32>
    %11 = vector.broadcast %10 : vector<1x256xf32> to vector<8x256xf32>
    %12 = arith.addf %9, %11 : vector<8x256xf32>
    %cst_11 = arith.constant 0.000000e+00 : f32
    %13 = vector.broadcast %cst_11 : f32 to vector<8x256xf32>
    %14 = arith.maximumf %12, %13 : vector<8x256xf32>
    %c0_12 = arith.constant 0 : index
    %c0_13 = arith.constant 0 : index
    %15 = vector.load %arg6[%c0_12, %c0_13] : memref<256x128xf32, #tpu.memory_space<vmem>>, vector<256x128xf32>
    %cst_14 = arith.constant dense<0.000000e+00> : vector<8x128xf32>
    %16 = tpu.matmul %14, %15, %cst_14 {dimension_numbers = #tpu.dot_dimension_numbers<[1], [0], [0], [1], [0, 0, 1, 1], [], []>} : vector<8x256xf32>, vector<256x128xf32>, vector<8x128xf32> -> vector<8x128xf32>
    %c0_15 = arith.constant 0 : index
    %c0_16 = arith.constant 0 : index
    %17 = vector.load %arg7[%c0_15, %c0_16] : memref<1x128xf32, #tpu.memory_space<vmem>>, vector<1x128xf32>
    %18 = vector.broadcast %17 : vector<1x128xf32> to vector<8x128xf32>
    %19 = arith.addf %16, %18 : vector<8x128xf32>
    %cst_17 = arith.constant 0.000000e+00 : f32
    %20 = vector.broadcast %cst_17 : f32 to vector<8x128xf32>
    %21 = arith.maximumf %19, %20 : vector<8x128xf32>
    %c0_18 = arith.constant 0 : index
    %c0_19 = arith.constant 0 : index
    %22 = vector.load %arg8[%c0_18, %c0_19] : memref<128x128xf32, #tpu.memory_space<vmem>>, vector<128x128xf32>
    %cst_20 = arith.constant dense<0.000000e+00> : vector<8x128xf32>
    %23 = tpu.matmul %21, %22, %cst_20 {dimension_numbers = #tpu.dot_dimension_numbers<[1], [0], [0], [1], [0, 0, 1, 1], [], []>} : vector<8x128xf32>, vector<128x128xf32>, vector<8x128xf32> -> vector<8x128xf32>
    %c0_21 = arith.constant 0 : index
    %c0_22 = arith.constant 0 : index
    %24 = vector.load %arg9[%c0_21, %c0_22] : memref<1x128xf32, #tpu.memory_space<vmem>>, vector<1x128xf32>
    %25 = vector.broadcast %24 : vector<1x128xf32> to vector<8x128xf32>
    %26 = arith.addf %23, %25 : vector<8x128xf32>
    %cst_23 = arith.constant 0.000000e+00 : f32
    %27 = vector.broadcast %cst_23 : f32 to vector<8x128xf32>
    %28 = arith.maximumf %26, %27 : vector<8x128xf32>
    %c0_24 = arith.constant 0 : index
    %c0_25 = arith.constant 0 : index
    %29 = vector.load %arg10[%c0_24, %c0_25] : memref<128x128xf32, #tpu.memory_space<vmem>>, vector<128x128xf32>
    %cst_26 = arith.constant dense<0.000000e+00> : vector<8x128xf32>
    %30 = tpu.matmul %28, %29, %cst_26 {dimension_numbers = #tpu.dot_dimension_numbers<[1], [0], [0], [1], [0, 0, 1, 1], [], []>} : vector<8x128xf32>, vector<128x128xf32>, vector<8x128xf32> -> vector<8x128xf32>
    %c0_27 = arith.constant 0 : index
    %c0_28 = arith.constant 0 : index
    %31 = vector.load %arg11[%c0_27, %c0_28] : memref<1x128xf32, #tpu.memory_space<vmem>>, vector<1x128xf32>
    %32 = vector.broadcast %31 : vector<1x128xf32> to vector<8x128xf32>
    %33 = arith.addf %30, %32 : vector<8x128xf32>
    %c0_29 = arith.constant 0 : index
    %c0_30 = arith.constant 0 : index
    %34 = vector.load %arg12[%c0_29, %c0_30] : memref<8x128xf32, #tpu.memory_space<vmem>>, vector<8x128xf32>
    tpu.vector_store %arg12[%c0_29, %c0_30], %33 {strides = array<i32>} : memref<8x128xf32, #tpu.memory_space<vmem>>, vector<8x128xf32>,
    return
  }
  func.func @transform_0(%arg0: i32) -> (i32, i32) {
    %c0_i32 = arith.constant 0 : i32
    %c0_i32_0 = arith.constant 0 : i32
    return %arg0, %c0_i32 : i32, i32
  }
  func.func @transform_1(%arg0: i32) -> (i32, i32) {
    %c0_i32 = arith.constant 0 : i32
    %c0_i32_0 = arith.constant 0 : i32
    %c0_i32_1 = arith.constant 0 : i32
    return %c0_i32, %c0_i32_0 : i32, i32
  }
  func.func @transform_2(%arg0: i32) -> (i32, i32) {
    %c0_i32 = arith.constant 0 : i32
    %c0_i32_0 = arith.constant 0 : i32
    %c0_i32_1 = arith.constant 0 : i32
    return %c0_i32, %c0_i32_0 : i32, i32
  }
  func.func @transform_3(%arg0: i32) -> (i32, i32) {
    %c0_i32 = arith.constant 0 : i32
    %c0_i32_0 = arith.constant 0 : i32
    %c0_i32_1 = arith.constant 0 : i32
    return %c0_i32, %c0_i32_0 : i32, i32
  }
  func.func @transform_4(%arg0: i32) -> (i32, i32) {
    %c0_i32 = arith.constant 0 : i32
    %c0_i32_0 = arith.constant 0 : i32
    %c0_i32_1 = arith.constant 0 : i32
    return %c0_i32, %c0_i32_0 : i32, i32
  }
  func.func @transform_5(%arg0: i32) -> (i32, i32) {
    %c0_i32 = arith.constant 0 : i32
    %c0_i32_0 = arith.constant 0 : i32
    %c0_i32_1 = arith.constant 0 : i32
    return %c0_i32, %c0_i32_0 : i32, i32
  }
  func.func @transform_6(%arg0: i32) -> (i32, i32) {
    %c0_i32 = arith.constant 0 : i32
    %c0_i32_0 = arith.constant 0 : i32
    %c0_i32_1 = arith.constant 0 : i32
    return %c0_i32, %c0_i32_0 : i32, i32
  }
  func.func @transform_7(%arg0: i32) -> (i32, i32) {
    %c0_i32 = arith.constant 0 : i32
    %c0_i32_0 = arith.constant 0 : i32
    %c0_i32_1 = arith.constant 0 : i32
    return %c0_i32, %c0_i32_0 : i32, i32
  }
  func.func @transform_8(%arg0: i32) -> (i32, i32) {
    %c0_i32 = arith.constant 0 : i32
    %c0_i32_0 = arith.constant 0 : i32
    %c0_i32_1 = arith.constant 0 : i32
    return %c0_i32, %c0_i32_0 : i32, i32
  }
  func.func @transform_9(%arg0: i32) -> (i32, i32) {
    %c0_i32 = arith.constant 0 : i32
    %c0_i32_0 = arith.constant 0 : i32
    %c0_i32_1 = arith.constant 0 : i32
    return %c0_i32, %c0_i32_0 : i32, i32
  }
  func.func @transform_10(%arg0: i32) -> (i32, i32) {
    %c0_i32 = arith.constant 0 : i32
    %c0_i32_0 = arith.constant 0 : i32
    %c0_i32_1 = arith.constant 0 : i32
    return %c0_i32, %c0_i32_0 : i32, i32
  }
  func.func @transform_11(%arg0: i32) -> (i32, i32) {
    %c0_i32 = arith.constant 0 : i32
    %c0_i32_0 = arith.constant 0 : i32
    return %arg0, %c0_i32 : i32, i32
  }
}

</mosaic_0001>

<bundles_post_ra>
// kernel: _lambda_.1
= control target key start
LH: loop header
LB: loop body
LE: loop exit
PB: predicated region body
PF: predicated region fallthrough
CT: control target
= control target key end

     0   :  { %16 = vsyncpa [#allocation3], 0  ;;  %s2059_s0 = inlined_call_operand.vmem [shape: f32[8,512], index: 0, kind: input, shape index: {}]   ;;  %s2060_s1 = inlined_call_operand.hbm [shape: f32[512,512], index: 1, kind: input, shape index: {}]   ;;  %s2061_s2 = inlined_call_operand.vmem [shape: f32[1,512], index: 2, kind: input, shape index: {}]   ;;  %s2062_s3 = inlined_call_operand.vmem [shape: f32[512,256], index: 3, kind: input, shape index: {}]   ;;  %s2063_s4 = inlined_call_operand.vmem [shape: f32[1,256], index: 4, kind: input, shape index: {}]   ;;  %s2064_s5 = inlined_call_operand.hbm [shape: f32[256,128], index: 5, kind: input, shape index: {}]   ;;  %s2065_s6 = inlined_call_operand.vmem [shape: f32[1,128], index: 6, kind: input, shape index: {}]   ;;  %s2066_s7 = inlined_call_operand.hbm [shape: f32[128,128], index: 7, kind: input, shape index: {}]   ;;  %s2067_s8 = inlined_call_operand.vmem [shape: f32[1,128], index: 8, kind: input, shape index: {}]   ;;  %s2068_s9 = inlined_call_operand.hbm [shape: f32[128,128], index: 9, kind: input, shape index: {}]   ;;  %s2069_s10 = inlined_call_operand.vmem [shape: f32[1,128], index: 10, kind: input, shape index: {}]   ;;  %s2070_s11 = inlined_call_operand.vmem [shape: f32[8,128], index: 11, kind: output, shape index: {}]  }
   0x1   :  { %17 = vsyncpa [#allocation5], 0 }
   0x2   :  { %18 = vsyncpa [#allocation8], 0  ;;  %s1490_s17 = smov [#allocation4]  }
   0x3   :  { %s44_s18 = sshll.u32 %s1490_s17, 4  ;;  %s45_s18 = int_to_ptr.vmem [resolvable:$true] %s44_s18 }
   0x4   :  { %s1412_s19 = scalar_lea.vmem %s45_s18, 4096  ;;  %p1417_p1 = scmp.lt.s32.totalorder %s45_s18, %s45_s18 }
   0x5   :  { %p1413_p0 = scmp.ne.s32.totalorder %s45_s18, %s1412_s19  ;;  %p1418_p2 = scmp.lt.s32.totalorder %s1412_s19, %s1412_s19 }
   0x7   :  { %p1419_p3 = por %p1418_p2, %p1417_p1 }
   0x9   :  { %p1420_p4 = pnand %p1419_p3, %p1413_p0 }
   0xb   :  { %1423 = shalt.err (!%p1420_p4)
}
   0xc   :  { %s1491_s20 = smov 128   ;;  %s1492_s21 = smov 8  }
   0xd   :  { %50 = dma.hbm_to_vmem [thread:$0]  %s2064_s5, 4096, %s45_s18, [#allocation5], %s1491_s20, %s1491_s20, %s1492_s21  }
   0xe   :  { %s1493_s24 = smov [#allocation2]  }
   0xf   :  { %s26_s25 = sshll.u32 %s1493_s24, 4  ;;  %s27_s25 = int_to_ptr.vmem [resolvable:$true] %s26_s25 }
  0x10   :  { %s1432_s26 = scalar_lea.vmem %s27_s25, 32768  ;;  %p1437_p6 = scmp.lt.s32.totalorder %s27_s25, %s27_s25 }
  0x11   :  { %p1433_p5 = scmp.ne.s32.totalorder %s27_s25, %s1432_s26  ;;  %p1438_p7 = scmp.lt.s32.totalorder %s1432_s26, %s1432_s26 }
  0x13   :  { %p1439_p8 = por %p1438_p7, %p1437_p6 }
  0x15   :  { %p1440_p9 = pnand %p1439_p8, %p1433_p5 }
  0x17   :  { %1443 = shalt.err (!%p1440_p9)
}
  0x18   :  { %s1494_s27 = smov 512   ;;  %s1495_s28 = smov 32  }
  0x19   :  { %32 = dma.hbm_to_vmem [thread:$0]  %s2060_s1, 32768, %s27_s25, [#allocation3], %s1494_s27, %s1494_s27, %s1495_s28  }
  0x1a   :  { %s1496_s12 = smov [#allocation6]   ;;  %s1497_s14 = smov [#allocation7]  }
  0x1b   :  { %s58_s13 = sshll.u32 %s1496_s12, 4  ;;  %s72_s5 = sshll.u32 %s1497_s14, 4  ;;  %s59_s13 = int_to_ptr.vmem [resolvable:$true] %s58_s13  ;;  %s73_s5 = int_to_ptr.vmem [resolvable:$true] %s72_s5 }
  0x1c   :  { %s1452_s15 = scalar_lea.vmem %s59_s13, 2048  ;;  %p1457_p11 = scmp.lt.s32.totalorder %s59_s13, %s59_s13 }
  0x1d   :  { %p1453_p10 = scmp.ne.s32.totalorder %s59_s13, %s1452_s15  ;;  %p1458_p12 = scmp.lt.s32.totalorder %s1452_s15, %s1452_s15 }
  0x1f   :  { %p1459_p13 = por %p1458_p12, %p1457_p11 }
  0x21   :  { %p1460_p0 = pnand %p1459_p13, %p1453_p10 }
  0x23   :  { %1463 = shalt.err (!%p1460_p0)
}
  0x24   :  { %64 = dma.hbm_to_vmem [thread:$0]  %s2066_s7, 2048, %s59_s13, [#allocation5], %s1491_s20, %s1491_s20, %s1492_s21  }
  0x25   :  { %s1472_s1 = scalar_lea.vmem %s73_s5, 2048  ;;  %p1477_p2 = scmp.lt.s32.totalorder %s73_s5, %s73_s5 }
  0x26   :  { %p1473_p1 = scmp.ne.s32.totalorder %s73_s5, %s1472_s1  ;;  %p1478_p3 = scmp.lt.s32.totalorder %s1472_s1, %s1472_s1 }
  0x28   :  { %p1479_p4 = por %p1478_p3, %p1477_p2 }
  0x2a   :  { %p1480_p5 = pnand %p1479_p4, %p1473_p1 }
  0x2c   :  { %1483 = shalt.err (!%p1480_p5)
}
  0x2d   :  { %78 = dma.hbm_to_vmem [thread:$0]  %s2068_s9, 2048, %s73_s5, [#allocation8], %s1491_s20, %s1491_s20, %s1492_s21  }
  0x2e   :  { %1484 = dma.done.wait [#allocation3], 32768  }
  0x2f   :  { %1485 = vsyncadd [#allocation3], 4294934528 }
  0x30   :  { %1486 = dma.done.wait [#allocation5], 6144  }
  0x31   :  { %1487 = vsyncadd [#allocation5], 4294961152 }
  0x32   :  { %1488 = dma.done.wait [#allocation8], 2048  }
  0x33   :  { %1489 = vsyncadd [#allocation8], 4294965248  ;;  %v158_v0 = vld [vmem:[#allocation2 + $0x1e8] sm:$0xff]  ;;  %v157_v2 = vld [vmem:[#allocation2 + $0x1e0] sm:$0xff]  ;;  %vm1499_vm0 = vmmov 0  }
  0x34   :  { %v286_v1 = vld [vmem:[#allocation2 + $0x5e8] sm:$0xff]  ;;  %375 = vmatprep.subr.mxu0 %v158_v0  ;;  %v285_v3 = vld [vmem:[#allocation2 + $0x5e0] sm:$0xff] }
  0x35   :  { %446 = vmatprep.subr.mxu1 %v286_v1  ;;  %v154_v4 = vld [vmem:[#allocation2 + $0x1c8] sm:$0xff]  ;;  %376 = vmatpush1.msra.mxu0 %v157_v2  ;;  %v153_v6 = vld [vmem:[#allocation2 + $0x1c0] sm:$0xff] }
  0x36   :  { %v282_v5 = vld [vmem:[#allocation2 + $0x5c8] sm:$0xff]  ;;  %447 = vmatpush1.msra.mxu1 %v285_v3  ;;  %v281_v7 = vld [vmem:[#allocation2 + $0x5c0] sm:$0xff]  ;;  %377 = vmatprep.subr.mxu0 %v154_v4 }
  0x37   :  { %v150_v8 = vld [vmem:[#allocation2 + $0x1a8] sm:$0xff]  ;;  %448 = vmatprep.subr.mxu1 %v282_v5  ;;  %v149_v10 = vld [vmem:[#allocation2 + $0x1a0] sm:$0xff]  ;;  %378 = vmatpush1.msra.mxu0 %v153_v6 }
  0x38   :  { %v278_v9 = vld [vmem:[#allocation2 + $0x5a8] sm:$0xff]  ;;  %v277_v11 = vld [vmem:[#allocation2 + $0x5a0] sm:$0xff]  ;;  %449 = vmatpush1.msra.mxu1 %v281_v7  ;;  %379 = vmatprep.subr.mxu0 %v150_v8 }
  0x39   :  { %v146_v12 = vld [vmem:[#allocation2 + $0x188] sm:$0xff]  ;;  %450 = vmatprep.subr.mxu1 %v278_v9  ;;  %v145_v14 = vld [vmem:[#allocation2 + $0x180] sm:$0xff]  ;;  %380 = vmatpush1.msra.mxu0 %v149_v10 }
  0x3a   :  { %v274_v13 = vld [vmem:[#allocation2 + $0x588] sm:$0xff]  ;;  %v273_v15 = vld [vmem:[#allocation2 + $0x580] sm:$0xff]  ;;  %451 = vmatpush1.msra.mxu1 %v277_v11  ;;  %381 = vmatprep.subr.mxu0 %v146_v12 }
  0x3b   :  { %v142_v16 = vld [vmem:[#allocation2 + $0x168] sm:$0xff]  ;;  %452 = vmatprep.subr.mxu1 %v274_v13  ;;  %v141_v18 = vld [vmem:[#allocation2 + $0x160] sm:$0xff]  ;;  %382 = vmatpush1.msra.mxu0 %v145_v14 }
  0x3c   :  { %v270_v17 = vld [vmem:[#allocation2 + $0x568] sm:$0xff]  ;;  %v269_v19 = vld [vmem:[#allocation2 + $0x560] sm:$0xff]  ;;  %453 = vmatpush1.msra.mxu1 %v273_v15  ;;  %383 = vmatprep.subr.mxu0 %v142_v16 }
  0x3d   :  { %v138_v20 = vld [vmem:[#allocation2 + $0x148] sm:$0xff]  ;;  %454 = vmatprep.subr.mxu1 %v270_v17  ;;  %v137_v22 = vld [vmem:[#allocation2 + $0x140] sm:$0xff]  ;;  %384 = vmatpush1.msra.mxu0 %v141_v18 }
  0x3e   :  { %v266_v21 = vld [vmem:[#allocation2 + $0x548] sm:$0xff]  ;;  %v265_v23 = vld [vmem:[#allocation2 + $0x540] sm:$0xff]  ;;  %455 = vmatpush1.msra.mxu1 %v269_v19  ;;  %385 = vmatprep.subr.mxu0 %v138_v20 }
  0x3f   :  { %v134_v24 = vld [vmem:[#allocation2 + $0x128] sm:$0xff]  ;;  %456 = vmatprep.subr.mxu1 %v266_v21  ;;  %v133_v26 = vld [vmem:[#allocation2 + $0x120] sm:$0xff]  ;;  %386 = vmatpush1.msra.mxu0 %v137_v22 }
  0x40   :  { %v262_v25 = vld [vmem:[#allocation2 + $0x528] sm:$0xff]  ;;  %v261_v27 = vld [vmem:[#allocation2 + $0x520] sm:$0xff]  ;;  %457 = vmatpush1.msra.mxu1 %v265_v23  ;;  %387 = vmatprep.subr.mxu0 %v134_v24 }
  0x41   :  { %v130_v28 = vld [vmem:[#allocation2 + $0x108] sm:$0xff]  ;;  %458 = vmatprep.subr.mxu1 %v262_v25  ;;  %v129_v30 = vld [vmem:[#allocation2 + $0x100] sm:$0xff]  ;;  %388 = vmatpush1.msra.mxu0 %v133_v26 }
  0x42   :  { %v258_v29 = vld [vmem:[#allocation2 + $0x508] sm:$0xff]  ;;  %v257_v31 = vld [vmem:[#allocation2 + $0x500] sm:$0xff]  ;;  %459 = vmatpush1.msra.mxu1 %v261_v27  ;;  %389 = vmatprep.subr.mxu0 %v130_v28 }
  0x43   :  { %v126_v32 = vld [vmem:[#allocation2 + $0xe8] sm:$0xff]  ;;  %460 = vmatprep.subr.mxu1 %v258_v29  ;;  %v125_v34 = vld [vmem:[#allocation2 + $0xe0] sm:$0xff]  ;;  %390 = vmatpush1.msra.mxu0 %v129_v30 }
  0x44   :  { %v254_v33 = vld [vmem:[#allocation2 + $0x4e8] sm:$0xff]  ;;  %v253_v35 = vld [vmem:[#allocation2 + $0x4e0] sm:$0xff]  ;;  %461 = vmatpush1.msra.mxu1 %v257_v31  ;;  %391 = vmatprep.subr.mxu0 %v126_v32 }
  0x45   :  { %v122_v36 = vld [vmem:[#allocation2 + $0xc8] sm:$0xff]  ;;  %462 = vmatprep.subr.mxu1 %v254_v33  ;;  %v121_v38 = vld [vmem:[#allocation2 + $0xc0] sm:$0xff]  ;;  %392 = vmatpush1.msra.mxu0 %v125_v34 }
  0x46   :  { %v250_v37 = vld [vmem:[#allocation2 + $0x4c8] sm:$0xff]  ;;  %v249_v39 = vld [vmem:[#allocation2 + $0x4c0] sm:$0xff]  ;;  %463 = vmatpush1.msra.mxu1 %v253_v35  ;;  %393 = vmatprep.subr.mxu0 %v122_v36 }
  0x47   :  { %v118_v40 = vld [vmem:[#allocation2 + $0xa8] sm:$0xff]  ;;  %464 = vmatprep.subr.mxu1 %v250_v37  ;;  %v117_v42 = vld [vmem:[#allocation2 + $0xa0] sm:$0xff]  ;;  %394 = vmatpush1.msra.mxu0 %v121_v38 }
  0x48   :  { %v246_v41 = vld [vmem:[#allocation2 + $0x4a8] sm:$0xff]  ;;  %v245_v43 = vld [vmem:[#allocation2 + $0x4a0] sm:$0xff]  ;;  %465 = vmatpush1.msra.mxu1 %v249_v39  ;;  %395 = vmatprep.subr.mxu0 %v118_v40 }
  0x49   :  { %v114_v44 = vld [vmem:[#allocation2 + $0x88] sm:$0xff]  ;;  %466 = vmatprep.subr.mxu1 %v246_v41  ;;  %v113_v46 = vld [vmem:[#allocation2 + $0x80] sm:$0xff]  ;;  %396 = vmatpush1.msra.mxu0 %v117_v42 }
  0x4a   :  { %v242_v45 = vld [vmem:[#allocation2 + $0x488] sm:$0xff]  ;;  %v241_v47 = vld [vmem:[#allocation2 + $0x480] sm:$0xff]  ;;  %467 = vmatpush1.msra.mxu1 %v245_v43  ;;  %397 = vmatprep.subr.mxu0 %v114_v44 }
  0x4b   :  { %v110_v48 = vld [vmem:[#allocation2 + $0x68] sm:$0xff]  ;;  %468 = vmatprep.subr.mxu1 %v242_v45  ;;  %v109_v50 = vld [vmem:[#allocation2 + $0x60] sm:$0xff]  ;;  %398 = vmatpush1.msra.mxu0 %v113_v46 }
  0x4c   :  { %v238_v49 = vld [vmem:[#allocation2 + $0x468] sm:$0xff]  ;;  %v237_v51 = vld [vmem:[#allocation2 + $0x460] sm:$0xff]  ;;  %469 = vmatpush1.msra.mxu1 %v241_v47  ;;  %399 = vmatprep.subr.mxu0 %v110_v48 }
  0x4d   :  { %v106_v52 = vld [vmem:[#allocation2 + $0x48] sm:$0xff]  ;;  %470 = vmatprep.subr.mxu1 %v238_v49  ;;  %v105_v54 = vld [vmem:[#allocation2 + $0x40] sm:$0xff]  ;;  %400 = vmatpush1.msra.mxu0 %v109_v50 }
  0x4e   :  { %v234_v53 = vld [vmem:[#allocation2 + $0x448] sm:$0xff]  ;;  %v233_v55 = vld [vmem:[#allocation2 + $0x440] sm:$0xff]  ;;  %471 = vmatpush1.msra.mxu1 %v237_v51  ;;  %401 = vmatprep.subr.mxu0 %v106_v52 }
  0x4f   :  { %v102_v56 = vld [vmem:[#allocation2 + $0x28] sm:$0xff]  ;;  %472 = vmatprep.subr.mxu1 %v234_v53  ;;  %v101_v58 = vld [vmem:[#allocation2 + $0x20] sm:$0xff]  ;;  %402 = vmatpush1.msra.mxu0 %v105_v54 }
  0x50   :  { %v230_v57 = vld [vmem:[#allocation2 + $0x428] sm:$0xff]  ;;  %v229_v59 = vld [vmem:[#allocation2 + $0x420] sm:$0xff]  ;;  %473 = vmatpush1.msra.mxu1 %v233_v55  ;;  %403 = vmatprep.subr.mxu0 %v102_v56 }
  0x51   :  { %v98_v60 = vld [vmem:[#allocation2 + $0x8] sm:$0xff]  ;;  %474 = vmatprep.subr.mxu1 %v230_v57  ;;  %v97_v62 = vld [vmem:[#allocation2] sm:$0xff]  ;;  %404 = vmatpush1.msra.mxu0 %v101_v58 }
  0x52   :  { %v226_v61 = vld [vmem:[#allocation2 + $0x408] sm:$0xff]  ;;  %v225_v63 = vld [vmem:[#allocation2 + $0x400] sm:$0xff]  ;;  %475 = vmatpush1.msra.mxu1 %v229_v59  ;;  %405 = vmatprep.subr.mxu0 %v98_v60 }
  0x53   :  { %v222_v0 = vld [vmem:[#allocation2 + $0x3e8] sm:$0xff]  ;;  %476 = vmatprep.subr.mxu1 %v226_v61  ;;  %v221_v2 = vld [vmem:[#allocation2 + $0x3e0] sm:$0xff]  ;;  %406 = vmatpush1.msra.mxu0 %v97_v62 }
  0x54   :  { %v350_v1 = vld [vmem:[#allocation2 + $0x7e8] sm:$0xff]  ;;  %v349_v3 = vld [vmem:[#allocation2 + $0x7e0] sm:$0xff]  ;;  %477 = vmatpush1.msra.mxu1 %v225_v63  ;;  %407 = vmatprep.subr.mxu0 %v222_v0 }
  0x55   :  { %v218_v4 = vld [vmem:[#allocation2 + $0x3c8] sm:$0xff]  ;;  %478 = vmatprep.subr.mxu1 %v350_v1  ;;  %v217_v6 = vld [vmem:[#allocation2 + $0x3c0] sm:$0xff]  ;;  %408 = vmatpush2.msra.mxu0 %v221_v2  ;;  %v1594_v2 = vld [vmem:[%s2059_s0 + $0x18] sm:$0xff] }
  0x56   :  { %v346_v5 = vld [vmem:[#allocation2 + $0x7c8] sm:$0xff]  ;;  %v345_v7 = vld [vmem:[#allocation2 + $0x7c0] sm:$0xff]  ;;  %479 = vmatpush2.msra.mxu1 %v349_v3  ;;  %409 = vmatprep.subr.mxu0 %v218_v4  ;;  %v160_v3 = vld [vmem:[#allocation2 + $0x1f8] sm:$0xff] }
  0x57   :  { %v214_v8 = vld [vmem:[#allocation2 + $0x3a8] sm:$0xff]  ;;  %480 = vmatprep.subr.mxu1 %v346_v5  ;;  %v213_v10 = vld [vmem:[#allocation2 + $0x3a0] sm:$0xff]  ;;  %410 = vmatpush2.msra.mxu0 %v217_v6  ;;  %v288_v4 = vld [vmem:[#allocation2 + $0x5f8] sm:$0xff] }
  0x58   :  { %v342_v9 = vld [vmem:[#allocation2 + $0x7a8] sm:$0xff]  ;;  %v341_v11 = vld [vmem:[#allocation2 + $0x7a0] sm:$0xff]  ;;  %481 = vmatpush2.msra.mxu1 %v345_v7  ;;  %411 = vmatprep.subr.mxu0 %v214_v8  ;;  %v1600_v5 = vld [vmem:[%s2059_s0 + $0x10] sm:$0xff] }
  0x59   :  { %v210_v12 = vld [vmem:[#allocation2 + $0x388] sm:$0xff]  ;;  %482 = vmatprep.subr.mxu1 %v342_v9  ;;  %v209_v14 = vld [vmem:[#allocation2 + $0x380] sm:$0xff]  ;;  %412 = vmatpush2.msra.mxu0 %v213_v10  ;;  %v159_v6 = vld [vmem:[#allocation2 + $0x1f0] sm:$0xff] }
  0x5a   :  { %v338_v13 = vld [vmem:[#allocation2 + $0x788] sm:$0xff]  ;;  %v337_v15 = vld [vmem:[#allocation2 + $0x780] sm:$0xff]  ;;  %483 = vmatpush2.msra.mxu1 %v341_v11  ;;  %413 = vmatprep.subr.mxu0 %v210_v12  ;;  %v287_v7 = vld [vmem:[#allocation2 + $0x5f0] sm:$0xff] }
  0x5b   :  { %v206_v16 = vld [vmem:[#allocation2 + $0x368] sm:$0xff]  ;;  %484 = vmatprep.subr.mxu1 %v338_v13  ;;  %v205_v18 = vld [vmem:[#allocation2 + $0x360] sm:$0xff]  ;;  %414 = vmatpush2.msra.mxu0 %v209_v14  ;;  %v156_v8 = vld [vmem:[#allocation2 + $0x1d8] sm:$0xff] }
  0x5c   :  { %v334_v17 = vld [vmem:[#allocation2 + $0x768] sm:$0xff]  ;;  %v333_v19 = vld [vmem:[#allocation2 + $0x760] sm:$0xff]  ;;  %485 = vmatpush2.msra.mxu1 %v337_v15  ;;  %415 = vmatprep.subr.mxu0 %v206_v16  ;;  %v284_v9 = vld [vmem:[#allocation2 + $0x5d8] sm:$0xff] }
  0x5d   :  { %v202_v20 = vld [vmem:[#allocation2 + $0x348] sm:$0xff]  ;;  %486 = vmatprep.subr.mxu1 %v334_v17  ;;  %v201_v22 = vld [vmem:[#allocation2 + $0x340] sm:$0xff]  ;;  %416 = vmatpush2.msra.mxu0 %v205_v18  ;;  %v155_v10 = vld [vmem:[#allocation2 + $0x1d0] sm:$0xff] }
  0x5e   :  { %v330_v21 = vld [vmem:[#allocation2 + $0x748] sm:$0xff]  ;;  %v329_v23 = vld [vmem:[#allocation2 + $0x740] sm:$0xff]  ;;  %487 = vmatpush2.msra.mxu1 %v333_v19  ;;  %417 = vmatprep.subr.mxu0 %v202_v20  ;;  %v283_v11 = vld [vmem:[#allocation2 + $0x5d0] sm:$0xff] }
  0x5f   :  { %v198_v24 = vld [vmem:[#allocation2 + $0x328] sm:$0xff]  ;;  %488 = vmatprep.subr.mxu1 %v330_v21  ;;  %v197_v26 = vld [vmem:[#allocation2 + $0x320] sm:$0xff]  ;;  %418 = vmatpush2.msra.mxu0 %v201_v22  ;;  %v152_v12 = vld [vmem:[#allocation2 + $0x1b8] sm:$0xff] }
  0x60   :  { %v326_v25 = vld [vmem:[#allocation2 + $0x728] sm:$0xff]  ;;  %v325_v27 = vld [vmem:[#allocation2 + $0x720] sm:$0xff]  ;;  %489 = vmatpush2.msra.mxu1 %v329_v23  ;;  %419 = vmatprep.subr.mxu0 %v198_v24  ;;  %v280_v13 = vld [vmem:[#allocation2 + $0x5b8] sm:$0xff] }
  0x61   :  { %v194_v28 = vld [vmem:[#allocation2 + $0x308] sm:$0xff]  ;;  %490 = vmatprep.subr.mxu1 %v326_v25  ;;  %v193_v30 = vld [vmem:[#allocation2 + $0x300] sm:$0xff]  ;;  %420 = vmatpush2.msra.mxu0 %v197_v26  ;;  %v151_v14 = vld [vmem:[#allocation2 + $0x1b0] sm:$0xff] }
  0x62   :  { %v322_v29 = vld [vmem:[#allocation2 + $0x708] sm:$0xff]  ;;  %v321_v31 = vld [vmem:[#allocation2 + $0x700] sm:$0xff]  ;;  %491 = vmatpush2.msra.mxu1 %v325_v27  ;;  %421 = vmatprep.subr.mxu0 %v194_v28  ;;  %v279_v15 = vld [vmem:[#allocation2 + $0x5b0] sm:$0xff] }
  0x63   :  { %v190_v32 = vld [vmem:[#allocation2 + $0x2e8] sm:$0xff]  ;;  %492 = vmatprep.subr.mxu1 %v322_v29  ;;  %v189_v34 = vld [vmem:[#allocation2 + $0x2e0] sm:$0xff]  ;;  %422 = vmatpush2.msra.mxu0 %v193_v30  ;;  %v148_v16 = vld [vmem:[#allocation2 + $0x198] sm:$0xff] }
  0x64   :  { %v318_v33 = vld [vmem:[#allocation2 + $0x6e8] sm:$0xff]  ;;  %v317_v35 = vld [vmem:[#allocation2 + $0x6e0] sm:$0xff]  ;;  %493 = vmatpush2.msra.mxu1 %v321_v31  ;;  %423 = vmatprep.subr.mxu0 %v190_v32  ;;  %v276_v17 = vld [vmem:[#allocation2 + $0x598] sm:$0xff] }
  0x65   :  { %v186_v36 = vld [vmem:[#allocation2 + $0x2c8] sm:$0xff]  ;;  %494 = vmatprep.subr.mxu1 %v318_v33  ;;  %v185_v38 = vld [vmem:[#allocation2 + $0x2c0] sm:$0xff]  ;;  %424 = vmatpush2.msra.mxu0 %v189_v34  ;;  %v147_v18 = vld [vmem:[#allocation2 + $0x190] sm:$0xff] }
  0x66   :  { %v314_v37 = vld [vmem:[#allocation2 + $0x6c8] sm:$0xff]  ;;  %v313_v39 = vld [vmem:[#allocation2 + $0x6c0] sm:$0xff]  ;;  %495 = vmatpush2.msra.mxu1 %v317_v35  ;;  %425 = vmatprep.subr.mxu0 %v186_v36  ;;  %v275_v19 = vld [vmem:[#allocation2 + $0x590] sm:$0xff] }
  0x67   :  { %v182_v40 = vld [vmem:[#allocation2 + $0x2a8] sm:$0xff]  ;;  %496 = vmatprep.subr.mxu1 %v314_v37  ;;  %v181_v42 = vld [vmem:[#allocation2 + $0x2a0] sm:$0xff]  ;;  %426 = vmatpush2.msra.mxu0 %v185_v38  ;;  %v144_v20 = vld [vmem:[#allocation2 + $0x178] sm:$0xff] }
  0x68   :  { %v310_v41 = vld [vmem:[#allocation2 + $0x6a8] sm:$0xff]  ;;  %v309_v43 = vld [vmem:[#allocation2 + $0x6a0] sm:$0xff]  ;;  %497 = vmatpush2.msra.mxu1 %v313_v39  ;;  %427 = vmatprep.subr.mxu0 %v182_v40  ;;  %v272_v21 = vld [vmem:[#allocation2 + $0x578] sm:$0xff] }
  0x69   :  { %v178_v44 = vld [vmem:[#allocation2 + $0x288] sm:$0xff]  ;;  %498 = vmatprep.subr.mxu1 %v310_v41  ;;  %v177_v46 = vld [vmem:[#allocation2 + $0x280] sm:$0xff]  ;;  %428 = vmatpush2.msra.mxu0 %v181_v42  ;;  %v143_v22 = vld [vmem:[#allocation2 + $0x170] sm:$0xff] }
  0x6a   :  { %v306_v45 = vld [vmem:[#allocation2 + $0x688] sm:$0xff]  ;;  %v305_v47 = vld [vmem:[#allocation2 + $0x680] sm:$0xff]  ;;  %499 = vmatpush2.msra.mxu1 %v309_v43  ;;  %429 = vmatprep.subr.mxu0 %v178_v44  ;;  %v271_v23 = vld [vmem:[#allocation2 + $0x570] sm:$0xff] }
  0x6b   :  { %v174_v48 = vld [vmem:[#allocation2 + $0x268] sm:$0xff]  ;;  %500 = vmatprep.subr.mxu1 %v306_v45  ;;  %v173_v50 = vld [vmem:[#allocation2 + $0x260] sm:$0xff]  ;;  %430 = vmatpush2.msra.mxu0 %v177_v46  ;;  %v140_v24 = vld [vmem:[#allocation2 + $0x158] sm:$0xff] }
  0x6c   :  { %v302_v49 = vld [vmem:[#allocation2 + $0x668] sm:$0xff]  ;;  %v301_v51 = vld [vmem:[#allocation2 + $0x660] sm:$0xff]  ;;  %501 = vmatpush2.msra.mxu1 %v305_v47  ;;  %431 = vmatprep.subr.mxu0 %v174_v48  ;;  %v268_v25 = vld [vmem:[#allocation2 + $0x558] sm:$0xff] }
  0x6d   :  { %v170_v52 = vld [vmem:[#allocation2 + $0x248] sm:$0xff]  ;;  %502 = vmatprep.subr.mxu1 %v302_v49  ;;  %v169_v54 = vld [vmem:[#allocation2 + $0x240] sm:$0xff]  ;;  %432 = vmatpush2.msra.mxu0 %v173_v50  ;;  %v139_v26 = vld [vmem:[#allocation2 + $0x150] sm:$0xff] }
  0x6e   :  { %v298_v53 = vld [vmem:[#allocation2 + $0x648] sm:$0xff]  ;;  %v297_v55 = vld [vmem:[#allocation2 + $0x640] sm:$0xff]  ;;  %503 = vmatpush2.msra.mxu1 %v301_v51  ;;  %433 = vmatprep.subr.mxu0 %v170_v52  ;;  %v267_v27 = vld [vmem:[#allocation2 + $0x550] sm:$0xff] }
  0x6f   :  { %v166_v56 = vld [vmem:[#allocation2 + $0x228] sm:$0xff]  ;;  %504 = vmatprep.subr.mxu1 %v298_v53  ;;  %v165_v58 = vld [vmem:[#allocation2 + $0x220] sm:$0xff]  ;;  %434 = vmatpush2.msra.mxu0 %v169_v54  ;;  %v136_v28 = vld [vmem:[#allocation2 + $0x138] sm:$0xff] }
  0x70   :  { %v294_v57 = vld [vmem:[#allocation2 + $0x628] sm:$0xff]  ;;  %v293_v59 = vld [vmem:[#allocation2 + $0x620] sm:$0xff]  ;;  %505 = vmatpush2.msra.mxu1 %v297_v55  ;;  %435 = vmatprep.subr.mxu0 %v166_v56  ;;  %v264_v29 = vld [vmem:[#allocation2 + $0x538] sm:$0xff] }
  0x71   :  { %v162_v60 = vld [vmem:[#allocation2 + $0x208] sm:$0xff]  ;;  %506 = vmatprep.subr.mxu1 %v294_v57  ;;  %v161_v62 = vld [vmem:[#allocation2 + $0x200] sm:$0xff]  ;;  %436 = vmatpush2.msra.mxu0 %v165_v58  ;;  %v135_v30 = vld [vmem:[#allocation2 + $0x130] sm:$0xff] }
  0x72   :  { %v290_v61 = vld [vmem:[#allocation2 + $0x608] sm:$0xff]  ;;  %507 = vmatpush2.msra.mxu1 %v293_v59  ;;  %v289_v0 = vld [vmem:[#allocation2 + $0x600] sm:$0xff]  ;;  %437 = vmatprep.subr.mxu0 %v162_v60  ;;  %v263_v31 = vld [vmem:[#allocation2 + $0x530] sm:$0xff] }
  0x73   :  { %v1584_v63 = vld [vmem:[%s2059_s0 + $0x8] sm:$0xff]  ;;  %v1589_v1 = vld [vmem:[%s2059_s0] sm:$0xff]  ;;  %508 = vmatprep.subr.mxu1 %v290_v61  ;;  %438 = vmatpush2.msra.mxu0 %v161_v62  ;;  %v132_v32 = vld [vmem:[#allocation2 + $0x118] sm:$0xff] }
  0x74   :  { %439 = vmatprep.mubr.f32.mxu0 %v1584_v63  ;;  %509 = vmatpush2.msra.mxu1 %v289_v0  ;;  %v260_v33 = vld [vmem:[#allocation2 + $0x518] sm:$0xff]  ;;  %v131_v34 = vld [vmem:[#allocation2 + $0x110] sm:$0xff] }
  0x75   :  { %440 = vmatmul.mubr.f32.vlgmr.msra.gmra.mxu0 %v1589_v1  ;;  %510 = vmatprep.mubr.f32.mxu1 %v1594_v2  ;;  %v259_v35 = vld [vmem:[#allocation2 + $0x510] sm:$0xff]  ;;  %v128_v36 = vld [vmem:[#allocation2 + $0xf8] sm:$0xff] }
  0x76   :  { %517 = vmatprep.subr.mxu0 %v160_v3  ;;  %588 = vmatprep.subr.mxu1 %v288_v4  ;;  %v256_v37 = vld [vmem:[#allocation2 + $0x4f8] sm:$0xff]  ;;  %v127_v38 = vld [vmem:[#allocation2 + $0xf0] sm:$0xff] }
  0x77   :  { %511 = vmatmul.mubr.f32.vlgmr.msra.gmra.mxu1 %v1600_v5  ;;  %518 = vmatpush1.msra.mxu0 %v159_v6  ;;  %v255_v39 = vld [vmem:[#allocation2 + $0x4f0] sm:$0xff]  ;;  %v124_v40 = vld [vmem:[#allocation2 + $0xd8] sm:$0xff] }
  0x78   :  { %589 = vmatpush1.msra.mxu1 %v287_v7  ;;  %519 = vmatprep.subr.mxu0 %v156_v8  ;;  %v252_v41 = vld [vmem:[#allocation2 + $0x4d8] sm:$0xff]  ;;  %v123_v42 = vld [vmem:[#allocation2 + $0xd0] sm:$0xff] }
  0x79   :  { %590 = vmatprep.subr.mxu1 %v284_v9  ;;  %520 = vmatpush1.msra.mxu0 %v155_v10  ;;  %v251_v43 = vld [vmem:[#allocation2 + $0x4d0] sm:$0xff]  ;;  %v120_v44 = vld [vmem:[#allocation2 + $0xb8] sm:$0xff] }
  0x7a   :  { %591 = vmatpush1.msra.mxu1 %v283_v11  ;;  %521 = vmatprep.subr.mxu0 %v152_v12  ;;  %v248_v45 = vld [vmem:[#allocation2 + $0x4b8] sm:$0xff]  ;;  %v119_v46 = vld [vmem:[#allocation2 + $0xb0] sm:$0xff] }
  0x7b   :  { %592 = vmatprep.subr.mxu1 %v280_v13  ;;  %522 = vmatpush1.msra.mxu0 %v151_v14  ;;  %v247_v47 = vld [vmem:[#allocation2 + $0x4b0] sm:$0xff]  ;;  %v116_v48 = vld [vmem:[#allocation2 + $0x98] sm:$0xff] }
  0x7c   :  { %593 = vmatpush1.msra.mxu1 %v279_v15  ;;  %523 = vmatprep.subr.mxu0 %v148_v16  ;;  %v244_v49 = vld [vmem:[#allocation2 + $0x498] sm:$0xff]  ;;  %v115_v50 = vld [vmem:[#allocation2 + $0x90] sm:$0xff] }
  0x7d   :  { %594 = vmatprep.subr.mxu1 %v276_v17  ;;  %524 = vmatpush1.msra.mxu0 %v147_v18  ;;  %v243_v51 = vld [vmem:[#allocation2 + $0x490] sm:$0xff]  ;;  %v112_v52 = vld [vmem:[#allocation2 + $0x78] sm:$0xff] }
  0x7e   :  { %595 = vmatpush1.msra.mxu1 %v275_v19  ;;  %525 = vmatprep.subr.mxu0 %v144_v20  ;;  %v240_v53 = vld [vmem:[#allocation2 + $0x478] sm:$0xff]  ;;  %v111_v54 = vld [vmem:[#allocation2 + $0x70] sm:$0xff] }
  0x7f   :  { %596 = vmatprep.subr.mxu1 %v272_v21  ;;  %526 = vmatpush1.msra.mxu0 %v143_v22  ;;  %v239_v55 = vld [vmem:[#allocation2 + $0x470] sm:$0xff]  ;;  %v108_v56 = vld [vmem:[#allocation2 + $0x58] sm:$0xff] }
  0x80   :  { %597 = vmatpush1.msra.mxu1 %v271_v23  ;;  %527 = vmatprep.subr.mxu0 %v140_v24  ;;  %v236_v57 = vld [vmem:[#allocation2 + $0x458] sm:$0xff]  ;;  %v107_v58 = vld [vmem:[#allocation2 + $0x50] sm:$0xff] }
  0x81   :  { %598 = vmatprep.subr.mxu1 %v268_v25  ;;  %528 = vmatpush1.msra.mxu0 %v139_v26  ;;  %v235_v59 = vld [vmem:[#allocation2 + $0x450] sm:$0xff]  ;;  %v104_v60 = vld [vmem:[#allocation2 + $0x38] sm:$0xff] }
  0x82   :  { %599 = vmatpush1.msra.mxu1 %v267_v27  ;;  %529 = vmatprep.subr.mxu0 %v136_v28  ;;  %v232_v61 = vld [vmem:[#allocation2 + $0x438] sm:$0xff]  ;;  %v103_v62 = vld [vmem:[#allocation2 + $0x30] sm:$0xff] }
  0x83   :  { %600 = vmatprep.subr.mxu1 %v264_v29  ;;  %530 = vmatpush1.msra.mxu0 %v135_v30  ;;  %v231_v0 = vld [vmem:[#allocation2 + $0x430] sm:$0xff]  ;;  %v100_v3 = vld [vmem:[#allocation2 + $0x18] sm:$0xff] }
  0x84   :  { %601 = vmatpush1.msra.mxu1 %v263_v31  ;;  %531 = vmatprep.subr.mxu0 %v132_v32  ;;  %v228_v4 = vld [vmem:[#allocation2 + $0x418] sm:$0xff]  ;;  %v99_v6 = vld [vmem:[#allocation2 + $0x10] sm:$0xff] }
  0x85   :  { %602 = vmatprep.subr.mxu1 %v260_v33  ;;  %532 = vmatpush1.msra.mxu0 %v131_v34  ;;  %v227_v7 = vld [vmem:[#allocation2 + $0x410] sm:$0xff]  ;;  %v224_v8 = vld [vmem:[#allocation2 + $0x3f8] sm:$0xff] }
  0x86   :  { %603 = vmatpush1.msra.mxu1 %v259_v35  ;;  %533 = vmatprep.subr.mxu0 %v128_v36  ;;  %v352_v9 = vld [vmem:[#allocation2 + $0x7f8] sm:$0xff]  ;;  %v223_v10 = vld [vmem:[#allocation2 + $0x3f0] sm:$0xff] }
  0x87   :  { %604 = vmatprep.subr.mxu1 %v256_v37  ;;  %534 = vmatpush1.msra.mxu0 %v127_v38  ;;  %v351_v11 = vld [vmem:[#allocation2 + $0x7f0] sm:$0xff]  ;;  %v220_v12 = vld [vmem:[#allocation2 + $0x3d8] sm:$0xff] }
  0x88   :  { %605 = vmatpush1.msra.mxu1 %v255_v39  ;;  %535 = vmatprep.subr.mxu0 %v124_v40  ;;  %v348_v13 = vld [vmem:[#allocation2 + $0x7d8] sm:$0xff]  ;;  %v219_v14 = vld [vmem:[#allocation2 + $0x3d0] sm:$0xff] }
  0x89   :  { %606 = vmatprep.subr.mxu1 %v252_v41  ;;  %536 = vmatpush1.msra.mxu0 %v123_v42  ;;  %v347_v15 = vld [vmem:[#allocation2 + $0x7d0] sm:$0xff]  ;;  %v216_v16 = vld [vmem:[#allocation2 + $0x3b8] sm:$0xff] }
  0x8a   :  { %607 = vmatpush1.msra.mxu1 %v251_v43  ;;  %537 = vmatprep.subr.mxu0 %v120_v44  ;;  %v344_v17 = vld [vmem:[#allocation2 + $0x7b8] sm:$0xff]  ;;  %v215_v18 = vld [vmem:[#allocation2 + $0x3b0] sm:$0xff] }
  0x8b   :  { %608 = vmatprep.subr.mxu1 %v248_v45  ;;  %538 = vmatpush1.msra.mxu0 %v119_v46  ;;  %v343_v19 = vld [vmem:[#allocation2 + $0x7b0] sm:$0xff]  ;;  %v212_v20 = vld [vmem:[#allocation2 + $0x398] sm:$0xff] }
  0x8c   :  { %609 = vmatpush1.msra.mxu1 %v247_v47  ;;  %539 = vmatprep.subr.mxu0 %v116_v48  ;;  %v340_v21 = vld [vmem:[#allocation2 + $0x798] sm:$0xff]  ;;  %v211_v22 = vld [vmem:[#allocation2 + $0x390] sm:$0xff] }
  0x8d   :  { %610 = vmatprep.subr.mxu1 %v244_v49  ;;  %540 = vmatpush1.msra.mxu0 %v115_v50  ;;  %v339_v23 = vld [vmem:[#allocation2 + $0x790] sm:$0xff]  ;;  %v208_v24 = vld [vmem:[#allocation2 + $0x378] sm:$0xff] }
  0x8e   :  { %611 = vmatpush1.msra.mxu1 %v243_v51  ;;  %541 = vmatprep.subr.mxu0 %v112_v52  ;;  %v336_v25 = vld [vmem:[#allocation2 + $0x778] sm:$0xff]  ;;  %v207_v26 = vld [vmem:[#allocation2 + $0x370] sm:$0xff] }
  0x8f   :  { %612 = vmatprep.subr.mxu1 %v240_v53  ;;  %542 = vmatpush1.msra.mxu0 %v111_v54  ;;  %v335_v27 = vld [vmem:[#allocation2 + $0x770] sm:$0xff]  ;;  %v204_v28 = vld [vmem:[#allocation2 + $0x358] sm:$0xff] }
  0x90   :  { %613 = vmatpush1.msra.mxu1 %v239_v55  ;;  %543 = vmatprep.subr.mxu0 %v108_v56  ;;  %v332_v29 = vld [vmem:[#allocation2 + $0x758] sm:$0xff]  ;;  %v203_v30 = vld [vmem:[#allocation2 + $0x350] sm:$0xff] }
  0x91   :  { %614 = vmatprep.subr.mxu1 %v236_v57  ;;  %544 = vmatpush1.msra.mxu0 %v107_v58  ;;  %v331_v31 = vld [vmem:[#allocation2 + $0x750] sm:$0xff]  ;;  %v200_v32 = vld [vmem:[#allocation2 + $0x338] sm:$0xff] }
  0x92   :  { %615 = vmatpush1.msra.mxu1 %v235_v59  ;;  %545 = vmatprep.subr.mxu0 %v104_v60  ;;  %v328_v33 = vld [vmem:[#allocation2 + $0x738] sm:$0xff]  ;;  %v199_v34 = vld [vmem:[#allocation2 + $0x330] sm:$0xff] }
  0x93   :  { %616 = vmatprep.subr.mxu1 %v232_v61  ;;  %546 = vmatpush1.msra.mxu0 %v103_v62  ;;  %v327_v35 = vld [vmem:[#allocation2 + $0x730] sm:$0xff]  ;;  %v196_v36 = vld [vmem:[#allocation2 + $0x318] sm:$0xff] }
  0x94   :  { %617 = vmatpush1.msra.mxu1 %v231_v0  ;;  %547 = vmatprep.subr.mxu0 %v100_v3  ;;  %v324_v37 = vld [vmem:[#allocation2 + $0x718] sm:$0xff]  ;;  %v195_v38 = vld [vmem:[#allocation2 + $0x310] sm:$0xff] }
  0x95   :  { %618 = vmatprep.subr.mxu1 %v228_v4  ;;  %548 = vmatpush1.msra.mxu0 %v99_v6  ;;  %v323_v39 = vld [vmem:[#allocation2 + $0x710] sm:$0xff]  ;;  %v192_v40 = vld [vmem:[#allocation2 + $0x2f8] sm:$0xff] }
  0x96   :  { %619 = vmatpush1.msra.mxu1 %v227_v7  ;;  %549 = vmatprep.subr.mxu0 %v224_v8  ;;  %v320_v41 = vld [vmem:[#allocation2 + $0x6f8] sm:$0xff]  ;;  %v191_v42 = vld [vmem:[#allocation2 + $0x2f0] sm:$0xff] }
  0x97   :  { %620 = vmatprep.subr.mxu1 %v352_v9  ;;  %550 = vmatpush2.msra.mxu0 %v223_v10  ;;  %v319_v43 = vld [vmem:[#allocation2 + $0x6f0] sm:$0xff]  ;;  %v188_v44 = vld [vmem:[#allocation2 + $0x2d8] sm:$0xff] }
  0x98   :  { %621 = vmatpush2.msra.mxu1 %v351_v11  ;;  %551 = vmatprep.subr.mxu0 %v220_v12  ;;  %v316_v45 = vld [vmem:[#allocation2 + $0x6d8] sm:$0xff]  ;;  %v187_v46 = vld [vmem:[#allocation2 + $0x2d0] sm:$0xff] }
  0x99   :  { %622 = vmatprep.subr.mxu1 %v348_v13  ;;  %552 = vmatpush2.msra.mxu0 %v219_v14  ;;  %v315_v47 = vld [vmem:[#allocation2 + $0x6d0] sm:$0xff]  ;;  %v184_v48 = vld [vmem:[#allocation2 + $0x2b8] sm:$0xff]  ;;  %v692_v14 = vld [vmem:[%s2062_s3 + $0xe8] sm:$0xff] }
  0x9a   :  { %623 = vmatpush2.msra.mxu1 %v347_v15  ;;  %553 = vmatprep.subr.mxu0 %v216_v16  ;;  %v312_v49 = vld [vmem:[#allocation2 + $0x6b8] sm:$0xff]  ;;  %v183_v50 = vld [vmem:[#allocation2 + $0x2b0] sm:$0xff]  ;;  %v687_v15 = vld [vmem:[%s2062_s3 + $0xc0] sm:$0xff] }
  0x9b   :  { %624 = vmatprep.subr.mxu1 %v344_v17  ;;  %554 = vmatpush2.msra.mxu0 %v215_v18  ;;  %v311_v51 = vld [vmem:[#allocation2 + $0x6b0] sm:$0xff]  ;;  %v180_v52 = vld [vmem:[#allocation2 + $0x298] sm:$0xff] }
  0x9c   :  { %625 = vmatpush2.msra.mxu1 %v343_v19  ;;  %555 = vmatprep.subr.mxu0 %v212_v20  ;;  %v308_v53 = vld [vmem:[#allocation2 + $0x698] sm:$0xff]  ;;  %v179_v54 = vld [vmem:[#allocation2 + $0x290] sm:$0xff]  ;;  %v756_v20 = vld [vmem:[%s2062_s3 + $0x2e8] sm:$0xff] }
  0x9d   :  { %626 = vmatprep.subr.mxu1 %v340_v21  ;;  %556 = vmatpush2.msra.mxu0 %v211_v22  ;;  %v307_v55 = vld [vmem:[#allocation2 + $0x690] sm:$0xff]  ;;  %v176_v56 = vld [vmem:[#allocation2 + $0x278] sm:$0xff]  ;;  %v684_v21 = vld [vmem:[%s2062_s3 + $0xa8] sm:$0xff] }
  0x9e   :  { %627 = vmatpush2.msra.mxu1 %v339_v23  ;;  %557 = vmatprep.subr.mxu0 %v208_v24  ;;  %v304_v57 = vld [vmem:[#allocation2 + $0x678] sm:$0xff]  ;;  %v175_v58 = vld [vmem:[#allocation2 + $0x270] sm:$0xff]  ;;  %v755_v22 = vld [vmem:[%s2062_s3 + $0x2e0] sm:$0xff] }
  0x9f   :  { %628 = vmatprep.subr.mxu1 %v336_v25  ;;  %558 = vmatpush2.msra.mxu0 %v207_v26  ;;  %v303_v59 = vld [vmem:[#allocation2 + $0x670] sm:$0xff]  ;;  %v172_v60 = vld [vmem:[#allocation2 + $0x258] sm:$0xff]  ;;  %v683_v23 = vld [vmem:[%s2062_s3 + $0xa0] sm:$0xff] }
  0xa0   :  { %629 = vmatpush2.msra.mxu1 %v335_v27  ;;  %559 = vmatprep.subr.mxu0 %v204_v28  ;;  %v300_v61 = vld [vmem:[#allocation2 + $0x658] sm:$0xff]  ;;  %v171_v62 = vld [vmem:[#allocation2 + $0x250] sm:$0xff]  ;;  %v752_v28 = vld [vmem:[%s2062_s3 + $0x2c8] sm:$0xff] }
  0xa1   :  { %630 = vmatprep.subr.mxu1 %v332_v29  ;;  %560 = vmatpush2.msra.mxu0 %v203_v30  ;;  %v299_v0 = vld [vmem:[#allocation2 + $0x650] sm:$0xff]  ;;  %v168_v3 = vld [vmem:[#allocation2 + $0x238] sm:$0xff]  ;;  %v680_v29 = vld [vmem:[%s2062_s3 + $0x88] sm:$0xff] }
  0xa2   :  { %631 = vmatpush2.msra.mxu1 %v331_v31  ;;  %561 = vmatprep.subr.mxu0 %v200_v32  ;;  %v296_v4 = vld [vmem:[#allocation2 + $0x638] sm:$0xff]  ;;  %v167_v6 = vld [vmem:[#allocation2 + $0x230] sm:$0xff]  ;;  %v751_v30 = vld [vmem:[%s2062_s3 + $0x2c0] sm:$0xff] }
  0xa3   :  { %632 = vmatprep.subr.mxu1 %v328_v33  ;;  %562 = vmatpush2.msra.mxu0 %v199_v34  ;;  %v295_v7 = vld [vmem:[#allocation2 + $0x630] sm:$0xff]  ;;  %v164_v8 = vld [vmem:[#allocation2 + $0x218] sm:$0xff]  ;;  %v679_v31 = vld [vmem:[%s2062_s3 + $0x80] sm:$0xff] }
  0xa4   :  { %633 = vmatpush2.msra.mxu1 %v327_v35  ;;  %563 = vmatprep.subr.mxu0 %v196_v36  ;;  %v292_v9 = vld [vmem:[#allocation2 + $0x618] sm:$0xff]  ;;  %v163_v10 = vld [vmem:[#allocation2 + $0x210] sm:$0xff]  ;;  %v748_v36 = vld [vmem:[%s2062_s3 + $0x2a8] sm:$0xff] }
  0xa5   :  { %634 = vmatprep.subr.mxu1 %v324_v37  ;;  %564 = vmatpush2.msra.mxu0 %v195_v38  ;;  %v291_v11 = vld [vmem:[#allocation2 + $0x610] sm:$0xff]  ;;  %v694_v12 = vld [vmem:[%s2062_s3 + $0xf8] sm:$0xff]  ;;  %v676_v37 = vld [vmem:[%s2062_s3 + $0x68] sm:$0xff] }
  0xa6   :  { %635 = vmatpush2.msra.mxu1 %v323_v39  ;;  %565 = vmatprep.subr.mxu0 %v192_v40  ;;  %v693_v13 = vld [vmem:[%s2062_s3 + $0xf0] sm:$0xff]  ;;  %v686_v16 = vld [vmem:[%s2062_s3 + $0xb8] sm:$0xff]  ;;  %v747_v38 = vld [vmem:[%s2062_s3 + $0x2a0] sm:$0xff] }
  0xa7   :  { %636 = vmatprep.subr.mxu1 %v320_v41  ;;  %566 = vmatpush2.msra.mxu0 %v191_v42  ;;  %v685_v17 = vld [vmem:[%s2062_s3 + $0xb0] sm:$0xff]  ;;  %v758_v18 = vld [vmem:[%s2062_s3 + $0x2f8] sm:$0xff]  ;;  %v675_v39 = vld [vmem:[%s2062_s3 + $0x60] sm:$0xff] }
  0xa8   :  { %637 = vmatpush2.msra.mxu1 %v319_v43  ;;  %567 = vmatprep.subr.mxu0 %v188_v44  ;;  %v757_v19 = vld [vmem:[%s2062_s3 + $0x2f0] sm:$0xff]  ;;  %v754_v24 = vld [vmem:[%s2062_s3 + $0x2d8] sm:$0xff]  ;;  %v744_v44 = vld [vmem:[%s2062_s3 + $0x288] sm:$0xff] }
  0xa9   :  { %638 = vmatprep.subr.mxu1 %v316_v45  ;;  %568 = vmatpush2.msra.mxu0 %v187_v46  ;;  %v682_v25 = vld [vmem:[%s2062_s3 + $0x98] sm:$0xff]  ;;  %v753_v26 = vld [vmem:[%s2062_s3 + $0x2d0] sm:$0xff]  ;;  %v672_v45 = vld [vmem:[%s2062_s3 + $0x48] sm:$0xff] }
  0xaa   :  { %639 = vmatpush2.msra.mxu1 %v315_v47  ;;  %569 = vmatprep.subr.mxu0 %v184_v48  ;;  %v681_v27 = vld [vmem:[%s2062_s3 + $0x90] sm:$0xff]  ;;  %v750_v32 = vld [vmem:[%s2062_s3 + $0x2b8] sm:$0xff]  ;;  %v743_v46 = vld [vmem:[%s2062_s3 + $0x280] sm:$0xff] }
  0xab   :  { %640 = vmatprep.subr.mxu1 %v312_v49  ;;  %570 = vmatpush2.msra.mxu0 %v183_v50  ;;  %v678_v33 = vld [vmem:[%s2062_s3 + $0x78] sm:$0xff]  ;;  %v749_v34 = vld [vmem:[%s2062_s3 + $0x2b0] sm:$0xff]  ;;  %v671_v47 = vld [vmem:[%s2062_s3 + $0x40] sm:$0xff] }
  0xac   :  { %641 = vmatpush2.msra.mxu1 %v311_v51  ;;  %571 = vmatprep.subr.mxu0 %v180_v52  ;;  %v677_v35 = vld [vmem:[%s2062_s3 + $0x70] sm:$0xff]  ;;  %v746_v40 = vld [vmem:[%s2062_s3 + $0x298] sm:$0xff]  ;;  %v740_v52 = vld [vmem:[%s2062_s3 + $0x268] sm:$0xff] }
  0xad   :  { %642 = vmatprep.subr.mxu1 %v308_v53  ;;  %572 = vmatpush2.msra.mxu0 %v179_v54  ;;  %v674_v41 = vld [vmem:[%s2062_s3 + $0x58] sm:$0xff]  ;;  %v745_v42 = vld [vmem:[%s2062_s3 + $0x290] sm:$0xff]  ;;  %v668_v53 = vld [vmem:[%s2062_s3 + $0x28] sm:$0xff] }
  0xae   :  { %643 = vmatpush2.msra.mxu1 %v307_v55  ;;  %573 = vmatprep.subr.mxu0 %v176_v56  ;;  %v673_v43 = vld [vmem:[%s2062_s3 + $0x50] sm:$0xff]  ;;  %v742_v48 = vld [vmem:[%s2062_s3 + $0x278] sm:$0xff]  ;;  %v739_v54 = vld [vmem:[%s2062_s3 + $0x260] sm:$0xff] }
  0xaf   :  { %644 = vmatprep.subr.mxu1 %v304_v57  ;;  %574 = vmatpush2.msra.mxu0 %v175_v58  ;;  %v670_v49 = vld [vmem:[%s2062_s3 + $0x38] sm:$0xff]  ;;  %v741_v50 = vld [vmem:[%s2062_s3 + $0x270] sm:$0xff]  ;;  %v667_v55 = vld [vmem:[%s2062_s3 + $0x20] sm:$0xff] }
  0xb0   :  { %645 = vmatpush2.msra.mxu1 %v303_v59  ;;  %575 = vmatprep.subr.mxu0 %v172_v60  ;;  %v669_v51 = vld [vmem:[%s2062_s3 + $0x30] sm:$0xff]  ;;  %v738_v56 = vld [vmem:[%s2062_s3 + $0x258] sm:$0xff]  ;;  %v736_v60 = vld [vmem:[%s2062_s3 + $0x248] sm:$0xff] }
  0xb1   :  { %646 = vmatprep.subr.mxu1 %v300_v61  ;;  %576 = vmatpush2.msra.mxu0 %v171_v62  ;;  %v666_v57 = vld [vmem:[%s2062_s3 + $0x18] sm:$0xff]  ;;  %v737_v58 = vld [vmem:[%s2062_s3 + $0x250] sm:$0xff]  ;;  %v664_v61 = vld [vmem:[%s2062_s3 + $0x8] sm:$0xff] }
  0xb2   :  { %647 = vmatpush2.msra.mxu1 %v299_v0  ;;  %577 = vmatprep.subr.mxu0 %v168_v3  ;;  %v665_v59 = vld [vmem:[%s2062_s3 + $0x10] sm:$0xff]  ;;  %v735_v62 = vld [vmem:[%s2062_s3 + $0x240] sm:$0xff]  ;;  %v734_v3 = vld [vmem:[%s2062_s3 + $0x238] sm:$0xff] }
  0xb3   :  { %648 = vmatprep.subr.mxu1 %v296_v4  ;;  %578 = vmatpush2.msra.mxu0 %v167_v6  ;;  %v663_v0 = vld [vmem:[%s2062_s3] sm:$0xff]  ;;  %v726_v4 = vld [vmem:[%s2062_s3 + $0x1f8] sm:$0xff]  ;;  %v733_v6 = vld [vmem:[%s2062_s3 + $0x230] sm:$0xff] }
  0xb4   :  { %649 = vmatpush2.msra.mxu1 %v295_v7  ;;  %579 = vmatprep.subr.mxu0 %v164_v8  ;;  %v725_v7 = vld [vmem:[%s2062_s3 + $0x1f0] sm:$0xff]  ;;  %v732_v8 = vld [vmem:[%s2062_s3 + $0x228] sm:$0xff] }
  0xb5   :  { %650 = vmatprep.subr.mxu1 %v292_v9  ;;  %580 = vmatpush2.msra.mxu0 %v163_v10  ;;  %v724_v9 = vld [vmem:[%s2062_s3 + $0x1e8] sm:$0xff]  ;;  %v731_v10 = vld [vmem:[%s2062_s3 + $0x220] sm:$0xff] }
  0xb6   :  { %581 = vmatprep.mubr.f32.mxu0 %v1584_v63  ;;  %651 = vmatpush2.msra.mxu1 %v291_v11  ;;  %v691_v63 = vld [vmem:[%s2062_s3 + $0xe0] sm:$0xff] }
  0xb7   :  { %652 = vmatprep.mubr.f32.mxu1 %v1594_v2  ;;  %582 = vmatmul.mubr.f32.vlgmr.msra.gmra.mxu0 %v1589_v1  ;;  %v690_v2 = vld [vmem:[%s2062_s3 + $0xd8] sm:$0xff]  ;;  %v689_v1 = vld [vmem:[%s2062_s3 + $0xd0] sm:$0xff]  ;;  %v723_v11 = vld [vmem:[%s2062_s3 + $0x1e0] sm:$0xff] }
  0xb8   :  { %653 = vmatmul.mubr.f32.vlgmr.msra.gmra.mxu1 %v1600_v5  ;;  %803 = vmatprep.subr.mxu0 %v694_v12  ;;  %v688_v5 = vld [vmem:[%s2062_s3 + $0xc8] sm:$0xff]  ;;  %v730_v12 = vld [vmem:[%s2062_s3 + $0x218] sm:$0xff] }
  0xb9   :  { %804 = vmatpush1.msra.mxu0 %v693_v13  ;;  %874 = vmatprep.subr.mxu1 %v758_v18  ;;  %v722_v13 = vld [vmem:[%s2062_s3 + $0x1d8] sm:$0xff]  ;;  %v789_v18 = vld [vmem:[%s2062_s3 + $0x3f0] sm:$0xff] }
  0xba   :  { %805 = vmatprep.subr.mxu0 %v692_v14  ;;  %875 = vmatpush1.msra.mxu1 %v757_v19  ;;  %v729_v14 = vld [vmem:[%s2062_s3 + $0x210] sm:$0xff] }
  0xbb   :  { %806 = vmatpush1.msra.mxu0 %v691_v63  ;;  %876 = vmatprep.subr.mxu1 %v756_v20  ;;  %v721_v63 = vld [vmem:[%s2062_s3 + $0x1d0] sm:$0xff]  ;;  %v788_v20 = vld [vmem:[%s2062_s3 + $0x3e8] sm:$0xff] }
  0xbc   :  { %807 = vmatprep.subr.mxu0 %v690_v2  ;;  %877 = vmatpush1.msra.mxu1 %v755_v22  ;;  %v728_v2 = vld [vmem:[%s2062_s3 + $0x208] sm:$0xff]  ;;  %v717_v19 = vld [vmem:[%s2062_s3 + $0x1b0] sm:$0xff]  ;;  %v787_v22 = vld [vmem:[%s2062_s3 + $0x3e0] sm:$0xff] }
  0xbd   :  { %808 = vmatpush1.msra.mxu0 %v689_v1  ;;  %878 = vmatprep.subr.mxu1 %v754_v24  ;;  %v720_v1 = vld [vmem:[%s2062_s3 + $0x1c8] sm:$0xff]  ;;  %v786_v24 = vld [vmem:[%s2062_s3 + $0x3d8] sm:$0xff] }
  0xbe   :  { %809 = vmatprep.subr.mxu0 %v688_v5  ;;  %879 = vmatpush1.msra.mxu1 %v753_v26  ;;  %v727_v5 = vld [vmem:[%s2062_s3 + $0x200] sm:$0xff]  ;;  %v785_v26 = vld [vmem:[%s2062_s3 + $0x3d0] sm:$0xff] }
  0xbf   :  { %810 = vmatpush1.msra.mxu0 %v687_v15  ;;  %880 = vmatprep.subr.mxu1 %v752_v28  ;;  %v719_v15 = vld [vmem:[%s2062_s3 + $0x1c0] sm:$0xff]  ;;  %v784_v28 = vld [vmem:[%s2062_s3 + $0x3c8] sm:$0xff] }
  0xc0   :  { %811 = vmatprep.subr.mxu0 %v686_v16  ;;  %881 = vmatpush1.msra.mxu1 %v751_v30  ;;  %v790_v16 = vld [vmem:[%s2062_s3 + $0x3f8] sm:$0xff]  ;;  %v783_v30 = vld [vmem:[%s2062_s3 + $0x3c0] sm:$0xff] }
  0xc1   :  { %812 = vmatpush1.msra.mxu0 %v685_v17  ;;  %882 = vmatprep.subr.mxu1 %v750_v32  ;;  %v718_v17 = vld [vmem:[%s2062_s3 + $0x1b8] sm:$0xff] }
  0xc2   :  { %813 = vmatprep.subr.mxu0 %v684_v21  ;;  %883 = vmatpush1.msra.mxu1 %v749_v34  ;;  %v716_v21 = vld [vmem:[%s2062_s3 + $0x1a8] sm:$0xff]  ;;  %v782_v32 = vld [vmem:[%s2062_s3 + $0x3b8] sm:$0xff]  ;;  %v781_v34 = vld [vmem:[%s2062_s3 + $0x3b0] sm:$0xff] }
  0xc3   :  { %814 = vmatpush1.msra.mxu0 %v683_v23  ;;  %884 = vmatprep.subr.mxu1 %v748_v36  ;;  %v715_v23 = vld [vmem:[%s2062_s3 + $0x1a0] sm:$0xff]  ;;  %v780_v36 = vld [vmem:[%s2062_s3 + $0x3a8] sm:$0xff] }
  0xc4   :  { %815 = vmatprep.subr.mxu0 %v682_v25  ;;  %885 = vmatpush1.msra.mxu1 %v747_v38  ;;  %v714_v25 = vld [vmem:[%s2062_s3 + $0x198] sm:$0xff]  ;;  %v779_v38 = vld [vmem:[%s2062_s3 + $0x3a0] sm:$0xff] }
  0xc5   :  { %816 = vmatpush1.msra.mxu0 %v681_v27  ;;  %886 = vmatprep.subr.mxu1 %v746_v40  ;;  %v713_v27 = vld [vmem:[%s2062_s3 + $0x190] sm:$0xff]  ;;  %v778_v40 = vld [vmem:[%s2062_s3 + $0x398] sm:$0xff] }
  0xc6   :  { %817 = vmatprep.subr.mxu0 %v680_v29  ;;  %887 = vmatpush1.msra.mxu1 %v745_v42  ;;  %v712_v29 = vld [vmem:[%s2062_s3 + $0x188] sm:$0xff]  ;;  %v777_v42 = vld [vmem:[%s2062_s3 + $0x390] sm:$0xff] }
  0xc7   :  { %818 = vmatpush1.msra.mxu0 %v679_v31  ;;  %888 = vmatprep.subr.mxu1 %v744_v44  ;;  %v711_v31 = vld [vmem:[%s2062_s3 + $0x180] sm:$0xff]  ;;  %v776_v44 = vld [vmem:[%s2062_s3 + $0x388] sm:$0xff] }
  0xc8   :  { %819 = vmatprep.subr.mxu0 %v678_v33  ;;  %889 = vmatpush1.msra.mxu1 %v743_v46  ;;  %v710_v33 = vld [vmem:[%s2062_s3 + $0x178] sm:$0xff]  ;;  %v775_v46 = vld [vmem:[%s2062_s3 + $0x380] sm:$0xff] }
  0xc9   :  { %820 = vmatpush1.msra.mxu0 %v677_v35  ;;  %890 = vmatprep.subr.mxu1 %v742_v48  ;;  %v709_v35 = vld [vmem:[%s2062_s3 + $0x170] sm:$0xff]  ;;  %v774_v48 = vld [vmem:[%s2062_s3 + $0x378] sm:$0xff] }
  0xca   :  { %821 = vmatprep.subr.mxu0 %v676_v37  ;;  %891 = vmatpush1.msra.mxu1 %v741_v50  ;;  %v708_v37 = vld [vmem:[%s2062_s3 + $0x168] sm:$0xff]  ;;  %v773_v50 = vld [vmem:[%s2062_s3 + $0x370] sm:$0xff] }
  0xcb   :  { %822 = vmatpush1.msra.mxu0 %v675_v39  ;;  %892 = vmatprep.subr.mxu1 %v740_v52  ;;  %v707_v39 = vld [vmem:[%s2062_s3 + $0x160] sm:$0xff]  ;;  %v772_v52 = vld [vmem:[%s2062_s3 + $0x368] sm:$0xff] }
  0xcc   :  { %823 = vmatprep.subr.mxu0 %v674_v41  ;;  %893 = vmatpush1.msra.mxu1 %v739_v54  ;;  %v706_v41 = vld [vmem:[%s2062_s3 + $0x158] sm:$0xff]  ;;  %v771_v54 = vld [vmem:[%s2062_s3 + $0x360] sm:$0xff] }
  0xcd   :  { %824 = vmatpush1.msra.mxu0 %v673_v43  ;;  %894 = vmatprep.subr.mxu1 %v738_v56  ;;  %v705_v43 = vld [vmem:[%s2062_s3 + $0x150] sm:$0xff]  ;;  %v770_v56 = vld [vmem:[%s2062_s3 + $0x358] sm:$0xff] }
  0xce   :  { %825 = vmatprep.subr.mxu0 %v672_v45  ;;  %895 = vmatpush1.msra.mxu1 %v737_v58  ;;  %v704_v45 = vld [vmem:[%s2062_s3 + $0x148] sm:$0xff]  ;;  %v769_v58 = vld [vmem:[%s2062_s3 + $0x350] sm:$0xff] }
  0xcf   :  { %826 = vmatpush1.msra.mxu0 %v671_v47  ;;  %896 = vmatprep.subr.mxu1 %v736_v60  ;;  %v703_v47 = vld [vmem:[%s2062_s3 + $0x140] sm:$0xff]  ;;  %v696_v60 = vld [vmem:[%s2062_s3 + $0x108] sm:$0xff] }
  0xd0   :  { %827 = vmatprep.subr.mxu0 %v670_v49  ;;  %897 = vmatpush1.msra.mxu1 %v735_v62  ;;  %v702_v49 = vld [vmem:[%s2062_s3 + $0x138] sm:$0xff]  ;;  %v768_v62 = vld [vmem:[%s2062_s3 + $0x348] sm:$0xff] }
  0xd1   :  { %828 = vmatpush1.msra.mxu0 %v669_v51  ;;  %898 = vmatprep.subr.mxu1 %v734_v3  ;;  %v701_v51 = vld [vmem:[%s2062_s3 + $0x130] sm:$0xff]  ;;  %v766_v3 = vld [vmem:[%s2062_s3 + $0x338] sm:$0xff] }
  0xd2   :  { %829 = vmatprep.subr.mxu0 %v668_v53  ;;  %899 = vmatpush1.msra.mxu1 %v733_v6  ;;  %v700_v53 = vld [vmem:[%s2062_s3 + $0x128] sm:$0xff] }
  0xd3   :  { %830 = vmatpush1.msra.mxu0 %v667_v55  ;;  %900 = vmatprep.subr.mxu1 %v732_v8  ;;  %v699_v55 = vld [vmem:[%s2062_s3 + $0x120] sm:$0xff]  ;;  %v764_v6 = vld [vmem:[%s2062_s3 + $0x328] sm:$0xff]  ;;  %v762_v8 = vld [vmem:[%s2062_s3 + $0x318] sm:$0xff] }
  0xd4   :  { %831 = vmatprep.subr.mxu0 %v666_v57  ;;  %901 = vmatpush1.msra.mxu1 %v731_v10  ;;  %v698_v57 = vld [vmem:[%s2062_s3 + $0x118] sm:$0xff]  ;;  %v760_v10 = vld [vmem:[%s2062_s3 + $0x308] sm:$0xff] }
  0xd5   :  { %832 = vmatpush1.msra.mxu0 %v665_v59  ;;  %902 = vmatprep.subr.mxu1 %v730_v12  ;;  %v697_v59 = vld [vmem:[%s2062_s3 + $0x110] sm:$0xff]  ;;  %v355_v12 = vlaneseq }
  0xd6   :  { %833 = vmatprep.subr.mxu0 %v664_v61  ;;  %903 = vmatpush1.msra.mxu1 %v729_v14  ;;  %v695_v61 = vld [vmem:[%s2062_s3 + $0x100] sm:$0xff] }
  0xd7   :  { %834 = vmatpush1.msra.mxu0 %v663_v0  ;;  %904 = vmatprep.subr.mxu1 %v728_v2  ;;  %v767_v0 = vld [vmem:[%s2062_s3 + $0x340] sm:$0xff] }
  0xd8   :  { %835 = vmatprep.subr.mxu0 %v726_v4  ;;  %905 = vmatpush1.msra.mxu1 %v727_v5  ;;  %v765_v4 = vld [vmem:[%s2062_s3 + $0x330] sm:$0xff] }
  0xd9   :  { %836 = vmatpush2.msra.mxu0 %v725_v7  ;;  %906 = vmatprep.subr.mxu1 %v790_v16  ;;  %v763_v7 = vld [vmem:[%s2062_s3 + $0x320] sm:$0xff] }
  0xda   :  { %837 = vmatprep.subr.mxu0 %v724_v9  ;;  %907 = vmatpush2.msra.mxu1 %v789_v18  ;;  %v761_v9 = vld [vmem:[%s2062_s3 + $0x310] sm:$0xff] }
  0xdb   :  { %838 = vmatpush2.msra.mxu0 %v723_v11  ;;  %908 = vmatprep.subr.mxu1 %v788_v20  ;;  %v759_v11 = vld [vmem:[%s2062_s3 + $0x300] sm:$0xff] }
  0xdc   :  { %839 = vmatprep.subr.mxu0 %v722_v13  ;;  %909 = vmatpush2.msra.mxu1 %v787_v22  ;;  %v1993_v13 = vshrl.u32 %v355_v12, 7  ;;  %v1498_v12 = vmov 0.0  }
  0xdd   :  { %840 = vmatpush2.msra.mxu0 %v721_v63  ;;  %910 = vmatprep.subr.mxu1 %v786_v24  ;;  %v353_v63 = vld [vmem:[%s2061_s2] sm:$0xf] }
  0xde   :  { %841 = vmatprep.subr.mxu0 %v720_v1  ;;  %911 = vmatpush2.msra.mxu1 %v785_v26  ;;  %v357_v14 = vsub.s32 0, %v1993_v13  ;;  %v361_v2 = vsub.s32 1, %v1993_v13  ;;  %v369_v26 = vsub.s32 3, %v1993_v13 }
  0xdf   :  { %842 = vmatpush2.msra.mxu0 %v719_v15  ;;  %912 = vmatprep.subr.mxu1 %v784_v28 }
  0xe0   :  { %843 = vmatprep.subr.mxu0 %v718_v17  ;;  %913 = vmatpush2.msra.mxu1 %v783_v30  ;;  %v358_v1 = vrot.slane %v353_v63, %v357_v14  ;;  %v362_v5 = vrot.slane %v353_v63, %v361_v2  ;;  %v370_v28 = vrot.slane %v353_v63, %v369_v26 }
  0xe1   :  { %844 = vmatpush2.msra.mxu0 %v717_v19  ;;  %914 = vmatprep.subr.mxu1 %v782_v32 }
  0xe2   :  { %845 = vmatprep.subr.mxu0 %v716_v21  ;;  %915 = vmatpush2.msra.mxu1 %v781_v34 }
  0xe3   :  { %846 = vmatpush2.msra.mxu0 %v715_v23  ;;  %916 = vmatprep.subr.mxu1 %v780_v36 }
  0xe4   :  { %847 = vmatprep.subr.mxu0 %v714_v25  ;;  %917 = vmatpush2.msra.mxu1 %v779_v38  ;;  %v365_v25 = vsub.s32 2, %v1993_v13  ;;  %v1059_v13 = vld [vmem:[#allocation6 + $0x10] sm:$0xff] }
  0xe5   :  { %848 = vmatpush2.msra.mxu0 %v713_v27  ;;  %918 = vmatprep.subr.mxu1 %v778_v40  ;;  %v962_v40 = vld [vmem:[#allocation4 + $0x78] sm:$0xff] }
  0xe6   :  { %849 = vmatprep.subr.mxu0 %v712_v29  ;;  %919 = vmatpush2.msra.mxu1 %v777_v42  ;;  %v366_v27 = vrot.slane %v353_v63, %v365_v25  ;;  %v961_v42 = vld [vmem:[#allocation4 + $0x70] sm:$0xff] }
  0xe7   :  { %850 = vmatpush2.msra.mxu0 %v711_v31  ;;  %920 = vmatprep.subr.mxu1 %v776_v44  ;;  %v960_v44 = vld [vmem:[#allocation4 + $0x68] sm:$0xff]  ;;  %v1071_v63 = vld [vmem:[#allocation6 + $0x70] sm:$0xff] }
  0xe8   :  { %851 = vmatprep.subr.mxu0 %v710_v33  ;;  %921 = vmatpush2.msra.mxu1 %v775_v46  ;;  %v959_v46 = vld [vmem:[#allocation4 + $0x60] sm:$0xff] }
  0xe9   :  { %852 = vmatpush2.msra.mxu0 %v709_v35  ;;  %922 = vmatprep.subr.mxu1 %v774_v48  ;;  %v958_v48 = vld [vmem:[#allocation4 + $0x58] sm:$0xff] }
  0xea   :  { %853 = vmatprep.subr.mxu0 %v708_v37  ;;  %923 = vmatpush2.msra.mxu1 %v773_v50  ;;  %v957_v50 = vld [vmem:[#allocation4 + $0x50] sm:$0xff] }
  0xeb   :  { %854 = vmatpush2.msra.mxu0 %v707_v39  ;;  %924 = vmatprep.subr.mxu1 %v772_v52  ;;  %v978_v39 = vld [vmem:[#allocation4 + $0xf8] sm:$0xff]  ;;  %v956_v52 = vld [vmem:[#allocation4 + $0x48] sm:$0xff] }
  0xec   :  { %855 = vmatprep.subr.mxu0 %v706_v41  ;;  %925 = vmatpush2.msra.mxu1 %v771_v54  ;;  %v977_v41 = vld [vmem:[#allocation4 + $0xf0] sm:$0xff]  ;;  %v955_v54 = vld [vmem:[#allocation4 + $0x40] sm:$0xff] }
  0xed   :  { %856 = vmatpush2.msra.mxu0 %v705_v43  ;;  %926 = vmatprep.subr.mxu1 %v770_v56  ;;  %v976_v43 = vld [vmem:[#allocation4 + $0xe8] sm:$0xff]  ;;  %v954_v56 = vld [vmem:[#allocation4 + $0x38] sm:$0xff] }
  0xee   :  { %857 = vmatprep.subr.mxu0 %v704_v45  ;;  %927 = vmatpush2.msra.mxu1 %v769_v58  ;;  %v975_v45 = vld [vmem:[#allocation4 + $0xe0] sm:$0xff]  ;;  %v953_v58 = vld [vmem:[#allocation4 + $0x30] sm:$0xff] }
  0xef   :  { %858 = vmatpush2.msra.mxu0 %v703_v47  ;;  %928 = vmatprep.subr.mxu1 %v768_v62  ;;  %v974_v47 = vld [vmem:[#allocation4 + $0xd8] sm:$0xff]  ;;  %v951_v62 = vld [vmem:[#allocation4 + $0x20] sm:$0xff] }
  0xf0   :  { %859 = vmatprep.subr.mxu0 %v702_v49  ;;  %929 = vmatpush2.msra.mxu1 %v767_v0  ;;  %v973_v49 = vld [vmem:[#allocation4 + $0xd0] sm:$0xff]  ;;  %v966_v0 = vld [vmem:[#allocation4 + $0x98] sm:$0xff] }
  0xf1   :  { %860 = vmatpush2.msra.mxu0 %v701_v51  ;;  %930 = vmatprep.subr.mxu1 %v766_v3  ;;  %v972_v51 = vld [vmem:[#allocation4 + $0xc8] sm:$0xff]  ;;  %v950_v3 = vld [vmem:[#allocation4 + $0x18] sm:$0xff] }
  0xf2   :  { %861 = vmatprep.subr.mxu0 %v700_v53  ;;  %931 = vmatpush2.msra.mxu1 %v765_v4  ;;  %v971_v53 = vld [vmem:[#allocation4 + $0xc0] sm:$0xff]  ;;  %v965_v4 = vld [vmem:[#allocation4 + $0x90] sm:$0xff] }
  0xf3   :  { %862 = vmatpush2.msra.mxu0 %v699_v55  ;;  %932 = vmatprep.subr.mxu1 %v764_v6  ;;  %v970_v55 = vld [vmem:[#allocation4 + $0xb8] sm:$0xff]  ;;  %v949_v6 = vld [vmem:[#allocation4 + $0x10] sm:$0xff] }
  0xf4   :  { %863 = vmatprep.subr.mxu0 %v698_v57  ;;  %933 = vmatpush2.msra.mxu1 %v763_v7  ;;  %v969_v57 = vld [vmem:[#allocation4 + $0xb0] sm:$0xff]  ;;  %v964_v7 = vld [vmem:[#allocation4 + $0x88] sm:$0xff] }
  0xf5   :  { %864 = vmatpush2.msra.mxu0 %v697_v59  ;;  %934 = vmatprep.subr.mxu1 %v762_v8  ;;  %v968_v59 = vld [vmem:[#allocation4 + $0xa8] sm:$0xff] }
  0xf6   :  { %865 = vmatprep.subr.mxu0 %v696_v60  ;;  %935 = vmatpush2.msra.mxu1 %v761_v9  ;;  %v952_v60 = vld [vmem:[#allocation4 + $0x28] sm:$0xff]  ;;  %v963_v9 = vld [vmem:[#allocation4 + $0x80] sm:$0xff] }
  0xf7   :  { %866 = vmatpush2.msra.mxu0 %v695_v61  ;;  %936 = vmatprep.subr.mxu1 %v760_v10  ;;  %v967_v61 = vld [vmem:[#allocation4 + $0xa0] sm:$0xff]  ;;  %v948_v8 = vld [vmem:[#allocation4 + $0x8] sm:$0xff] }
  0xf8   :  { %937 = vmatpush2.msra.mxu1 %v759_v11  ;;  %1255 = vmatprep.subr.mxu0 %v978_v39  ;;  %v947_v10 = vld [vmem:[#allocation4] sm:$0xff]  ;;  %v1072_v11 = vld [vmem:[#allocation6 + $0x78] sm:$0xff]  ;;  %v1164_v39 = vld [vmem:[#allocation7 + $0x68] sm:$0xff] }
  0xf9   :  { %1324 = vmatprep.subr.mxu1 %v1498_v12 }
 0x135   :  { %v441_v15 = vpop.f32.mrf.mxu0 }
 0x136   :  { %v442_v16 = vadd.f32 %v441_v15, %v358_v1  ;;  %v1070_v1 = vld [vmem:[#allocation6 + $0x68] sm:$0xff]  ;;  %v1068_v15 = vld [vmem:[#allocation6 + $0x58] sm:$0xff] }
 0x137   :  { %v512_v17 = vpop.f32.mrf.mxu1  ;;  %v443_v18 = vpop.f32.mrf.mxu0 }
 0x138   :  { %v444_v19 = vadd.f32 %v443_v18, %v362_v5  ;;  %v513_v20 = vadd.f32 %v512_v17, %v442_v16  ;;  %v1069_v5 = vld [vmem:[#allocation6 + $0x60] sm:$0xff]  ;;  %v1067_v16 = vld [vmem:[#allocation6 + $0x50] sm:$0xff]  ;;  %v1066_v17 = vld [vmem:[#allocation6 + $0x48] sm:$0xff] }
 0x139   :  { %v514_v21 = vpop.f32.mrf.mxu1  ;;  %v1065_v18 = vld [vmem:[#allocation6 + $0x40] sm:$0xff] }
 0x13a   :  { %v515_v22 = vadd.f32 %v514_v21, %v444_v19  ;;  %v659_v24 = vmax.f32 %v513_v20, 0.0  ;;  %v1064_v19 = vld [vmem:[#allocation6 + $0x38] sm:$0xff]  ;;  %v1063_v20 = vld [vmem:[#allocation6 + $0x30] sm:$0xff]  ;;  %v1062_v21 = vld [vmem:[#allocation6 + $0x28] sm:$0xff] }
 0x13c   :  { %v660_v23 = vmax.f32 %v515_v22, 0.0  ;;  %v791_v22 = vld [vmem:[%s2063_s4] sm:$0x3] }
 0x13d   :  { %v800_v25 = vrot.slane %v791_v22, %v361_v2  ;;  %v1057_v2 = vld [vmem:[#allocation6] sm:$0xff] }
 0x13e   :  { %867 = vmatprep.mubr.f32.mxu0 %v660_v23 }
 0x13f   :  { %868 = vmatmul.mubr.f32.vlgmr.msra.gmra.mxu0 %v659_v24  ;;  %v796_v24 = vrot.slane %v791_v22, %v357_v14  ;;  %v1058_v14 = vld [vmem:[#allocation6 + $0x8] sm:$0xff] }
 0x140   :  { %1256 = vmatpush3.msra.mxu0 %v962_v40  ;;  %v1163_v40 = vld [vmem:[#allocation7 + $0x60] sm:$0xff] }
 0x141   :  { %1257 = vmatprep.subr.mxu0 %v977_v41  ;;  %v1162_v41 = vld [vmem:[#allocation7 + $0x58] sm:$0xff] }
 0x142   :  { %1258 = vmatpush3.msra.mxu0 %v961_v42  ;;  %v1161_v42 = vld [vmem:[#allocation7 + $0x50] sm:$0xff] }
 0x143   :  { %1259 = vmatprep.subr.mxu0 %v976_v43  ;;  %v1160_v43 = vld [vmem:[#allocation7 + $0x48] sm:$0xff] }
 0x144   :  { %1260 = vmatpush3.msra.mxu0 %v960_v44  ;;  %v1159_v44 = vld [vmem:[#allocation7 + $0x40] sm:$0xff] }
 0x145   :  { %1261 = vmatprep.subr.mxu0 %v975_v45  ;;  %v1158_v45 = vld [vmem:[#allocation7 + $0x38] sm:$0xff] }
 0x146   :  { %1262 = vmatpush3.msra.mxu0 %v959_v46  ;;  %v1157_v46 = vld [vmem:[#allocation7 + $0x30] sm:$0xff] }
 0x147   :  { %1263 = vmatprep.subr.mxu0 %v974_v47  ;;  %v1156_v47 = vld [vmem:[#allocation7 + $0x28] sm:$0xff] }
 0x148   :  { %1264 = vmatpush3.msra.mxu0 %v958_v48  ;;  %v1155_v48 = vld [vmem:[#allocation7 + $0x20] sm:$0xff] }
 0x149   :  { %1265 = vmatprep.subr.mxu0 %v973_v49  ;;  %v1154_v49 = vld [vmem:[#allocation7 + $0x18] sm:$0xff] }
 0x14a   :  { %1266 = vmatpush3.msra.mxu0 %v957_v50 }
 0x14b   :  { %1267 = vmatprep.subr.mxu0 %v972_v51  ;;  %v1252_v51 = vld [vmem:[%s2065_s6] ss:$0 sm:$0xff] }
 0x14c   :  { %1268 = vmatpush3.msra.mxu0 %v956_v52 }
 0x14d   :  { %1269 = vmatprep.subr.mxu0 %v971_v53 }
 0x14e   :  { %1270 = vmatpush3.msra.mxu0 %v955_v54 }
 0x14f   :  { %1271 = vmatprep.subr.mxu0 %v970_v55 }
 0x150   :  { %1272 = vmatpush3.msra.mxu0 %v954_v56  ;;  %v1153_v56 = vld [vmem:[#allocation7 + $0x10] sm:$0xff] }
 0x151   :  { %1273 = vmatprep.subr.mxu0 %v969_v57  ;;  %v1152_v57 = vld [vmem:[#allocation7 + $0x8] sm:$0xff] }
 0x152   :  { %1274 = vmatpush3.msra.mxu0 %v953_v58  ;;  %v1151_v58 = vld [vmem:[#allocation7] sm:$0xff] }
 0x153   :  { %1275 = vmatprep.subr.mxu0 %v968_v59  ;;  %v1253_v59 = vld [vmem:[%s2067_s8] ss:$0 sm:$0xff] }
 0x154   :  { %1276 = vmatpush3.msra.mxu0 %v952_v60 }
 0x155   :  { %1277 = vmatprep.subr.mxu0 %v967_v61 }
 0x156   :  { %1278 = vmatpush3.msra.mxu0 %v951_v62 }
 0x157   :  { %1279 = vmatprep.subr.mxu0 %v966_v0 }
 0x158   :  { %1280 = vmatpush3.msra.mxu0 %v950_v3  ;;  %v1254_v3 = vld [vmem:[%s2069_s10] ss:$0 sm:$0xff] }
 0x159   :  { %1281 = vmatprep.subr.mxu0 %v965_v4 }
 0x15a   :  { %1282 = vmatpush3.msra.mxu0 %v949_v6 }
 0x15b   :  { %1283 = vmatprep.subr.mxu0 %v964_v7 }
 0x15c   :  { %1284 = vmatpush3.msra.mxu0 %v948_v8 }
 0x15d   :  { %1285 = vmatprep.subr.mxu0 %v963_v9 }
 0x15e   :  { %1286 = vmatpush3.msra.mxu0 %v947_v10 }
 0x15f   :  { %1359 = vmatprep.subr.mxu0 %v1498_v12 }
 0x177   :  { %v583_v29 = vpop.f32.mrf.mxu0 }
 0x178   :  { %v654_v30 = vpop.f32.mrf.mxu1  ;;  %v584_v31 = vadd.f32 %v583_v29, %v366_v27 }
 0x179   :  { %v585_v32 = vpop.f32.mrf.mxu0 }
 0x17a   :  { %v586_v33 = vadd.f32 %v585_v32, %v370_v28  ;;  %v655_v34 = vadd.f32 %v654_v30, %v584_v31  ;;  %v656_v35 = vpop.f32.mrf.mxu1 }
 0x17c   :  { %v657_v36 = vadd.f32 %v656_v35, %v586_v33  ;;  %v661_v38 = vmax.f32 %v655_v34, 0.0  ;;  %v1061_v35 = vld [vmem:[#allocation6 + $0x20] sm:$0xff] }
 0x17e   :  { %v662_v37 = vmax.f32 %v657_v36, 0.0  ;;  %v1060_v36 = vld [vmem:[#allocation6 + $0x18] sm:$0xff] }
 0x180   :  { %938 = vmatprep.mubr.f32.mxu1 %v662_v37  ;;  %v1166_v37 = vld [vmem:[#allocation7 + $0x78] sm:$0xff] }
 0x181   :  { %939 = vmatmul.mubr.f32.vlgmr.msra.gmra.mxu1 %v661_v38  ;;  %v1165_v38 = vld [vmem:[#allocation7 + $0x70] sm:$0xff] }
 0x182   :  { %1325 = vmatpush3.msra.mxu1 %v1072_v11  ;;  %1356 = vmatprep.mubr.msk.f32.mxu1 %vm1499_vm0, %v1498_v12 }
 0x183   :  { %1326 = vmatprep.subr.mxu1 %v1498_v12 }
 0x184   :  { %1327 = vmatpush3.msra.mxu1 %v1071_v63 }
 0x185   :  { %1328 = vmatprep.subr.mxu1 %v1498_v12 }
 0x186   :  { %1329 = vmatpush3.msra.mxu1 %v1070_v1 }
 0x187   :  { %1330 = vmatprep.subr.mxu1 %v1498_v12 }
 0x188   :  { %1331 = vmatpush3.msra.mxu1 %v1069_v5 }
 0x189   :  { %1332 = vmatprep.subr.mxu1 %v1498_v12 }
 0x18a   :  { %1333 = vmatpush3.msra.mxu1 %v1068_v15 }
 0x18b   :  { %1334 = vmatprep.subr.mxu1 %v1498_v12 }
 0x18c   :  { %1335 = vmatpush3.msra.mxu1 %v1067_v16 }
 0x18d   :  { %1336 = vmatprep.subr.mxu1 %v1498_v12 }
 0x18e   :  { %1337 = vmatpush3.msra.mxu1 %v1066_v17 }
 0x18f   :  { %1338 = vmatprep.subr.mxu1 %v1498_v12 }
 0x190   :  { %1339 = vmatpush3.msra.mxu1 %v1065_v18 }
 0x191   :  { %1340 = vmatprep.subr.mxu1 %v1498_v12 }
 0x192   :  { %1341 = vmatpush3.msra.mxu1 %v1064_v19 }
 0x193   :  { %1342 = vmatprep.subr.mxu1 %v1498_v12 }
 0x194   :  { %1343 = vmatpush3.msra.mxu1 %v1063_v20 }
 0x195   :  { %1344 = vmatprep.subr.mxu1 %v1498_v12 }
 0x196   :  { %1345 = vmatpush3.msra.mxu1 %v1062_v21 }
 0x197   :  { %1346 = vmatprep.subr.mxu1 %v1498_v12 }
 0x198   :  { %1347 = vmatpush3.msra.mxu1 %v1061_v35 }
 0x199   :  { %1348 = vmatprep.subr.mxu1 %v1498_v12 }
 0x19a   :  { %1349 = vmatpush3.msra.mxu1 %v1060_v36 }
 0x19b   :  { %1350 = vmatprep.subr.mxu1 %v1498_v12 }
 0x19c   :  { %1351 = vmatpush3.msra.mxu1 %v1059_v13 }
 0x19d   :  { %1352 = vmatprep.subr.mxu1 %v1498_v12 }
 0x19e   :  { %1353 = vmatpush3.msra.mxu1 %v1058_v14 }
 0x19f   :  { %1354 = vmatprep.subr.mxu1 %v1498_v12 }
 0x1a0   :  { %1355 = vmatpush3.msra.mxu1 %v1057_v2 }
 0x1ff   :  { %v869_v23 = vpop.f32.mrf.mxu0 }
 0x200   :  { %v870_v27 = vadd.f32 %v869_v23, %v796_v24 }
 0x201   :  { %v871_v26 = vpop.f32.mrf.mxu0 }
 0x202   :  { %v872_v29 = vadd.f32 %v871_v26, %v800_v25 }
 0x241   :  { %v940_v28 = vpop.f32.mrf.mxu1 }
 0x242   :  { %v941_v30 = vadd.f32 %v940_v28, %v870_v27 }
 0x243   :  { %v942_v31 = vpop.f32.mrf.mxu1 }
 0x244   :  { %v943_v32 = vadd.f32 %v942_v31, %v872_v29  ;;  %v945_v34 = vmax.f32 %v941_v30, 0.0 }
 0x246   :  { %v946_v33 = vmax.f32 %v943_v32, 0.0 }
 0x248   :  { %1050 = vmatprep.mubr.f32.mxu0 %v946_v33 }
 0x249   :  { %1051 = vmatmul.mubr.f32.vlgmr.msra.gmra.mxu0 %v945_v34 }
 0x24a   :  { %1391 = vmatprep.mubr.msk.f32.mxu0 %vm1499_vm0, %v1498_v12  ;;  %1360 = vmatpush3.msra.mxu0 %v1166_v37 }
 0x24b   :  { %1361 = vmatprep.subr.mxu0 %v1498_v12 }
 0x24c   :  { %1362 = vmatpush3.msra.mxu0 %v1165_v38 }
 0x24d   :  { %1363 = vmatprep.subr.mxu0 %v1498_v12 }
 0x24e   :  { %1364 = vmatpush3.msra.mxu0 %v1164_v39 }
 0x24f   :  { %1365 = vmatprep.subr.mxu0 %v1498_v12 }
 0x250   :  { %1366 = vmatpush3.msra.mxu0 %v1163_v40 }
 0x251   :  { %1367 = vmatprep.subr.mxu0 %v1498_v12 }
 0x252   :  { %1368 = vmatpush3.msra.mxu0 %v1162_v41 }
 0x253   :  { %1369 = vmatprep.subr.mxu0 %v1498_v12 }
 0x254   :  { %1370 = vmatpush3.msra.mxu0 %v1161_v42 }
 0x255   :  { %1371 = vmatprep.subr.mxu0 %v1498_v12 }
 0x256   :  { %1372 = vmatpush3.msra.mxu0 %v1160_v43 }
 0x257   :  { %1373 = vmatprep.subr.mxu0 %v1498_v12 }
 0x258   :  { %1374 = vmatpush3.msra.mxu0 %v1159_v44 }
 0x259   :  { %1375 = vmatprep.subr.mxu0 %v1498_v12 }
 0x25a   :  { %1376 = vmatpush3.msra.mxu0 %v1158_v45 }
 0x25b   :  { %1377 = vmatprep.subr.mxu0 %v1498_v12 }
 0x25c   :  { %1378 = vmatpush3.msra.mxu0 %v1157_v46 }
 0x25d   :  { %1379 = vmatprep.subr.mxu0 %v1498_v12 }
 0x25e   :  { %1380 = vmatpush3.msra.mxu0 %v1156_v47 }
 0x25f   :  { %1381 = vmatprep.subr.mxu0 %v1498_v12 }
 0x260   :  { %1382 = vmatpush3.msra.mxu0 %v1155_v48 }
 0x261   :  { %1383 = vmatprep.subr.mxu0 %v1498_v12 }
 0x262   :  { %1384 = vmatpush3.msra.mxu0 %v1154_v49 }
 0x263   :  { %1385 = vmatprep.subr.mxu0 %v1498_v12 }
 0x264   :  { %1386 = vmatpush3.msra.mxu0 %v1153_v56 }
 0x265   :  { %1387 = vmatprep.subr.mxu0 %v1498_v12 }
 0x266   :  { %1388 = vmatpush3.msra.mxu0 %v1152_v57 }
 0x267   :  { %1389 = vmatprep.subr.mxu0 %v1498_v12 }
 0x268   :  { %1390 = vmatpush3.msra.mxu0 %v1151_v58 }
 0x309   :  { %v1287_v50 = vpop.f32.mrf.mxu0 }
 0x30b   :  { %v1288_v52 = vpop.f32.mrf.mxu0 }
 0x30c   :  { %v1289_v53 = vadd.f32 %v1288_v52, %v1287_v50 }
 0x30e   :  { %v1053_v54 = vadd.f32 %v1289_v53, %v1252_v51 }
 0x310   :  { %v1056_v55 = vmax.f32 %v1053_v54, 0.0 }
 0x312   :  { %1357 = vmatmul.mubr.f32.vlgmr.msra.gmra.mxu1 %v1056_v55 }
 0x3d2   :  { %v1146_v60 = vpop.f32.mrf.mxu1 }
 0x3d3   :  { %v1147_v61 = vadd.f32 %v1253_v59, %v1146_v60 }
 0x3d4   :  { %v1358_v62 = vpop.f32.mrf.mxu1 }
 0x3d5   :  { %v1150_v0 = vmax.f32 %v1147_v61, 0.0 }
 0x3d7   :  { %1392 = vmatmul.mubr.f32.vlgmr.msra.gmra.mxu0 %v1150_v0 }
 0x497   :  { %v1240_v4 = vpop.f32.mrf.mxu0 }
 0x498   :  { %v1241_v6 = vadd.f32 %v1254_v3, %v1240_v4 }
 0x499   :  { %v1393_v7 = vpop.f32.mrf.mxu0 }
 0x49a   :  { %1244 = vst [vmem:[%s2070_s11] sm:$0xff] %v1241_v6 }
 0x49b   :  { %1249 = vsyncpa [#allocation3], 1 }
 0x49c   :  { %1250 = vsyncpa [#allocation5], 1 }
 0x49d   :  { %1251 = vsyncpa [#allocation8], 1 }

</bundles_post_ra>
